<compile_context>
chip_gen: v7x
topology: tpu7x:2x2x1
jax: 0.10.0
libtpu: 0.0.40
codegen_flags: <defaults>
</compile_context>

<pallas_src>
import math

import jax
import jax.numpy as jnp
from jax.experimental import pallas as pl
from jax.experimental.pallas import tpu as pltpu


def _cyclical_kernel(x_ref, scale_ref, o_ref):
    """x_ref: (rows, L); scale_ref: (rows, 1) f32; o_ref: (2, rows, L)."""
    phase = x_ref[...].astype(jnp.float32) * scale_ref[...]   # lane-broadcast of per-row scale
    o_ref[0] = jnp.sin(phase).astype(o_ref.dtype)             # dense (rows, L) store
    o_ref[1] = jnp.cos(phase).astype(o_ref.dtype)             # dense (rows, L) store


def _round_up(x, m):
    return (x + m - 1) // m * m


def cyclical_embedding(time_coords, frequencies, *, max_out_block_bytes=4 * 1024 * 1024):
    """Pallas implementation of Cyclical_embedding.forward.

    Args:
      time_coords: [B, T, C, H, W] float array, C == len(frequencies).
      frequencies: static list of Python numbers.
    Returns:
      [B, T, 2*C, H, W] array (sin/cos interleaved per frequency).
    """
    B, T, C, H, W = time_coords.shape
    assert C == len(frequencies), "channel dim must match number of frequencies"
    BT, HW = B * T, H * W
    R = C * BT  # total rows after folding the channel axis into the sublane axis

    # Channel-major 2-D layout: row = c*BT + (b*T + t), lane = h*W + w.
    x2d = jnp.transpose(time_coords, (2, 0, 1, 3, 4)).reshape(R, HW)

    # Per-row scale 2*pi / frequency[c] (f32 column vector).
    scales = jnp.asarray([2.0 * math.pi / float(f) for f in frequencies], jnp.float32)
    scale_col = jnp.repeat(scales, BT)[:, None]  # (R, 1)

    # Row-block choice: a single block for small inputs (block == full array ⇒
    # no (8,128) divisibility constraint); otherwise tile rows in multiples of
    # 8 with the output block capped at ~max_out_block_bytes (v7x VMEM budget).
    out_bytes_per_row = 2 * HW * time_coords.dtype.itemsize
    cap = max(8, (max_out_block_bytes // out_bytes_per_row) // 8 * 8)
    if R <= cap:
        block_rows, R_pad = R, R
    else:
        block_rows = cap
        R_pad = _round_up(R, block_rows)
        if R_pad != R:
            x2d = jnp.pad(x2d, ((0, R_pad - R), (0, 0)))
            scale_col = jnp.pad(scale_col, ((0, R_pad - R), (0, 0)))

    grid = (R_pad // block_rows,)

    out = pl.pallas_call(
        _cyclical_kernel,
        out_shape=jax.ShapeDtypeStruct((2, R_pad, HW), time_coords.dtype),
        grid=grid,
        in_specs=[
            pl.BlockSpec((block_rows, HW), lambda j: (j, 0)),
            pl.BlockSpec((block_rows, 1), lambda j: (j, 0)),
        ],
        out_specs=pl.BlockSpec((2, block_rows, HW), lambda j: (0, j, 0)),
        compiler_params=pltpu.CompilerParams(
            dimension_semantics=("parallel",)
        ),
    )(x2d, scale_col)

    # Interleave sin/cos into the [B, T, 2C, H, W] channel order (wrapper-side
    # layout plumbing on a tiny array).
    out = out[:, :R].reshape(2, C, B, T, H, W)
    out = jnp.transpose(out, (2, 3, 1, 0, 4, 5)).reshape(B, T, 2 * C, H, W)
    return out


def cyclical_embedding_ref(time_coords, frequencies):
    """Pure-JAX reference mirroring the PyTorch forward exactly."""
    embs = []
    for i, f in enumerate(frequencies):
        embs.append(jnp.sin(2.0 * jnp.pi * time_coords[:, :, i] / f))
        embs.append(jnp.cos(2.0 * jnp.pi * time_coords[:, :, i] / f))
    return jnp.stack(embs, axis=2)


if __name__ == "__main__":
    frequencies = [12.0, 31.0, 24.0, 7.0]  # e.g. month / day / hour / weekday
    B, T, C, H, W = 2, 8, len(frequencies), 16, 16

    key = jax.random.PRNGKey(0)
    # time-like coordinates in [0, 31)
    time_coords = jax.random.uniform(
        key, (B, T, C, H, W), dtype=jnp.float32, minval=0.0, maxval=31.0
    )

    out = jax.block_until_ready(cyclical_embedding(time_coords, frequencies))
    ref = cyclical_embedding_ref(time_coords, frequencies)

    assert out.shape == (B, T, 2 * C, H, W), out.shape
    assert jnp.allclose(out, ref, atol=1e-5, rtol=1e-5), "mismatch vs reference"

    print("KERNEL_OK")
</pallas_src>

<mosaic_0001>
module attributes {stable_mosaic.version = 11 : i64} {
  func.func @_cyclical_kernel(%arg0: i32, %arg1: memref<64x256xf32, #tpu.memory_space<vmem>>, %arg2: memref<64x1xf32, #tpu.memory_space<vmem>>, %arg3: memref<2x64x256xf32, #tpu.memory_space<vmem>>) attributes {dimension_semantics = [#tpu.dimension_semantics<parallel>], iteration_bounds = array<i64: 1>, scalar_prefetch = 0 : i64, scratch_operands = 0 : i64, tpu.core_type = #tpu.core_type<tc>, window_params = [{transform_indices = @transform_0, window_bounds = array<i64: 64, 256>}, {transform_indices = @transform_1, window_bounds = array<i64: 64, 1>}, {transform_indices = @transform_2, window_bounds = array<i64: 2, 64, 256>}]} {
    %c0 = arith.constant 0 : index
    %c0_0 = arith.constant 0 : index
    %0 = vector.load %arg1[%c0, %c0_0] : memref<64x256xf32, #tpu.memory_space<vmem>>, vector<64x256xf32>
    %c0_1 = arith.constant 0 : index
    %c0_2 = arith.constant 0 : index
    %1 = vector.load %arg2[%c0_1, %c0_2] : memref<64x1xf32, #tpu.memory_space<vmem>>, vector<64x1xf32>
    %2 = vector.broadcast %1 : vector<64x1xf32> to vector<64x256xf32>
    %3 = arith.mulf %0, %2 : vector<64x256xf32>
    %4 = math.sin %3 : vector<64x256xf32>
    %c0_3 = arith.constant 0 : index
    %c0_4 = arith.constant 0 : index
    %c0_5 = arith.constant 0 : index
    %5 = vector.load %arg3[%c0_3, %c0_4, %c0_5] : memref<2x64x256xf32, #tpu.memory_space<vmem>>, vector<1x64x256xf32>
    %6 = vector.shape_cast %5 : vector<1x64x256xf32> to vector<64x256xf32>
    %7 = vector.shape_cast %4 : vector<64x256xf32> to vector<1x64x256xf32>
    tpu.vector_store %arg3[%c0_3, %c0_4, %c0_5], %7 {strides = array<i32>} : memref<2x64x256xf32, #tpu.memory_space<vmem>>, vector<1x64x256xf32>,
    %8 = math.cos %3 : vector<64x256xf32>
    %c1 = arith.constant 1 : index
    %c0_6 = arith.constant 0 : index
    %c0_7 = arith.constant 0 : index
    %9 = vector.load %arg3[%c1, %c0_6, %c0_7] : memref<2x64x256xf32, #tpu.memory_space<vmem>>, vector<1x64x256xf32>
    %10 = vector.shape_cast %9 : vector<1x64x256xf32> to vector<64x256xf32>
    %11 = vector.shape_cast %8 : vector<64x256xf32> to vector<1x64x256xf32>
    tpu.vector_store %arg3[%c1, %c0_6, %c0_7], %11 {strides = array<i32>} : memref<2x64x256xf32, #tpu.memory_space<vmem>>, vector<1x64x256xf32>,
    return
  }
  func.func @transform_0(%arg0: i32) -> (i32, i32) {
    %c0_i32 = arith.constant 0 : i32
    %c0_i32_0 = arith.constant 0 : i32
    return %arg0, %c0_i32 : i32, i32
  }
  func.func @transform_1(%arg0: i32) -> (i32, i32) {
    %c0_i32 = arith.constant 0 : i32
    %c0_i32_0 = arith.constant 0 : i32
    return %arg0, %c0_i32 : i32, i32
  }
  func.func @transform_2(%arg0: i32) -> (i32, i32, i32) {
    %c0_i32 = arith.constant 0 : i32
    %c0_i32_0 = arith.constant 0 : i32
    %c0_i32_1 = arith.constant 0 : i32
    return %c0_i32, %arg0, %c0_i32_0 : i32, i32, i32
  }
}

</mosaic_0001>

<bundles_post_ra>
// kernel: tpu_custom_call.1
= control target key start
LH: loop header
LB: loop body
LE: loop exit
PB: predicated region body
PF: predicated region fallthrough
CT: control target
= control target key end

     0   :  { %7 = vsyncpa [#allocation3], 0  ;;  %s5581_s0 = inlined_call_operand.hbm [shape: f32[64,256], index: 0, kind: input, shape index: {}]   ;;  %s5582_s1 = inlined_call_operand.vmem [shape: f32[64,1], index: 1, kind: input, shape index: {}]   ;;  %s5583_s2 = inlined_call_operand.hbm [shape: f32[2,64,256], index: 2, kind: output, shape index: {}]  }
   0x1   :  { %8 = vsyncpa [#allocation4], 0  ;;  %s3785_s9 = smov [#allocation2]   ;;  %s3737_s13 = scalar_lea.hbm %s5581_s0, 2048 }
   0x2   :  { %s14_s10 = sshll.u32 %s3785_s9, 4  ;;  %p3738_p0 = scmp.ne.s32.totalorder %s5581_s0, %s3737_s13  ;;  %s15_s10 = int_to_ptr.vmem [resolvable:$true] %s14_s10 }
   0x3   :  { %p3741_p1 = scmp.lt.u32.totalorder %s3737_s13, %s5581_s0 }
   0x5   :  { %p3743_p2 = pnand %p3741_p1, %p3738_p0 }
   0x7   :  { %3746 = shalt.err (!%p3743_p2)
}
   0x8   :  { %s3747_s18 = scalar_lea.vmem %s15_s10, 2048  ;;  %p3752_p4 = scmp.lt.s32.totalorder %s15_s10, %s15_s10 }
   0x9   :  { %p3748_p3 = scmp.ne.s32.totalorder %s15_s10, %s3747_s18  ;;  %p3753_p5 = scmp.lt.s32.totalorder %s3747_s18, %s3747_s18 }
   0xb   :  { %p3754_p6 = por %p3753_p5, %p3752_p4 }
   0xd   :  { %p3755_p7 = pnand %p3754_p6, %p3748_p3 }
   0xf   :  { %3758 = shalt.err (!%p3755_p7)
}
  0x10   :  { %s3786_s19 = smov 256   ;;  %s3787_s20 = smov 16  }
  0x11   :  { %20 = dma.hbm_to_vmem [thread:$0]  %s5581_s0, 2048, %s15_s10, [#allocation3], %s3786_s19, %s3786_s19, %s3787_s20  }
  0x12   :  { %3781 = dma.done.wait [#allocation3], 2048  }
  0x13   :  { %3782 = vsyncadd [#allocation3], 4294965248  ;;  %v3788_v0 = vmov 0   ;;  %v44_v1 = vld [vmem:[%s5582_s1 + $0x10] sm:$0xff]  ;;  %v42_v2 = vld [vmem:[%s5582_s1] sm:$0xff] }
  0x14   :  { %3672 = vset.pattern.permute.xlu1 %v3788_v0  ;;  %3671 = vset.pattern.permute.xlu0 %v3788_v0  ;;  %v45_v3 = vld [vmem:[%s5582_s1 + $0x18] sm:$0xff]  ;;  %v43_v4 = vld [vmem:[%s5582_s1 + $0x8] sm:$0xff]  ;;  %v46_v6 = vld [vmem:[%s5582_s1 + $0x20] sm:$0xff]  ;;  %v5606_v45 = vmov 683565275  }
  0x15   :  { %62 = vperm.xlu1 %3672, %v44_v1   ;;  %52 = vperm.xlu0 %3671, %v42_v2   ;;  %v47_v5 = vld [vmem:[%s5582_s1 + $0x28] sm:$0xff]  ;;  %v49_v7 = vld [vmem:[%s5582_s1 + $0x38] sm:$0xff]  ;;  %v48_v8 = vld [vmem:[%s5582_s1 + $0x30] sm:$0xff]  ;;  %v5595_v49 = vmov 2475754826   ;;  %s3795_s1 = smov [#allocation5]  }
  0x16   :  { %v26_v9 = vld [vmem:[#allocation2] sm:$0xff]  ;;  %v27_v10 = vld [vmem:[#allocation2 + $0x8] sm:$0xff]  ;;  %v28_v16 = vld [vmem:[#allocation2 + $0x10] sm:$0xff]  ;;  %v5597_v51 = vmov 2131351028   ;;  %s3456_s10 = sshll.u32 %s3795_s1, 4  ;;  %s3457_s10 = int_to_ptr.vmem [resolvable:$true] %s3456_s10 }
  0x17   :  { %v29_v31 = vld [vmem:[#allocation2 + $0x18] sm:$0xff]  ;;  %v5599_v53 = vmov 2102212464   ;;  %v5609_v55 = vmov 920167782   ;;  %s3759_s11 = scalar_lea.vmem %s3457_s10, 4096  ;;  %p3764_p9 = scmp.lt.s32.totalorder %s3457_s10, %s3457_s10 }
  0x18   :  { %v5601_v62 = vmov 1326507024   ;;  %p3760_p8 = scmp.ne.s32.totalorder %s3457_s10, %s3759_s11  ;;  %p3765_p10 = scmp.lt.s32.totalorder %s3759_s11, %s3759_s11 }
  0x19   :  { %67 = vperm.xlu1 %3672, %v45_v3   ;;  %57 = vperm.xlu0 %3671, %v43_v4  }
  0x1a   :  { %p3766_p11 = por %p3765_p10, %p3764_p9 }
  0x1c   :  { %p3767_p12 = pnand %p3766_p11, %p3760_p8 }
  0x1d   :  { %77 = vperm.xlu1 %3672, %v47_v5   ;;  %72 = vperm.xlu0 %3671, %v46_v6  }
  0x21   :  { %87 = vperm.xlu1 %3672, %v49_v7   ;;  %82 = vperm.xlu0 %3671, %v48_v8  }
  0x94   :  { %v53_v11 = vpop.permute.xlu0 %52 }
  0x95   :  { %v3850_v12 = vmul.f32 %v53_v11, %v26_v9  ;;  %v3852_v13 = vmul.f32 %v53_v11, %v27_v10 }
  0x97   :  { %v109_v14 = vand.u32 2139095040, %v3850_v12  ;;  %v106_v17 = vand.u32 2147483647, %v3850_v12  ;;  %v210_v18 = vand.u32 2147483647, %v3852_v13  ;;  %v213_v19 = vand.u32 2139095040, %v3852_v13 }
  0x98   :  { %v58_v15 = vpop.permute.xlu0 %57  ;;  %vm108_vm13 = vcmp.lt.s32.totalorder %v3850_v12, 0  ;;  %vm212_vm15 = vcmp.lt.s32.totalorder %v3852_v13, 0 }
  0x99   :  { %v110_v20 = vshrl.u32 %v109_v14, 23  ;;  %v214_v21 = vshrl.u32 %v213_v19, 23  ;;  %v3858_v22 = vmul.f32 %v58_v15, %v28_v16  ;;  %v113_v24 = vand.u32 8388607, %v106_v17 }
  0x9a   :  { %v217_v26 = vand.u32 8388607, %v210_v18  ;;  %v3866_v37 = vmul.f32 %v58_v15, %v29_v31  ;;  %vm3953_vm14 = vcmp.le.f32.partialorder %v106_v17, 0.7853982 }
  0x9b   :  { %v3468_v23 = vadd.s32 4294967169, %v110_v20  ;;  %v3472_v25 = vadd.s32 4294967169, %v214_v21  ;;  %v314_v29 = vand.u32 2147483647, %v3858_v22  ;;  %v317_v30 = vand.u32 2139095040, %v3858_v22 }
  0x9c   :  { %v114_v32 = vor.u32 8388608, %v113_v24  ;;  %v218_v33 = vor.u32 8388608, %v217_v26  ;;  %5675 = vst [vmem:[#allocation8_spill] sm:$0xff] %v3866_v37 }
  0x9d   :  { %v116_v27 = vadd.s32 1, %v3468_v23  ;;  %v220_v28 = vadd.s32 1, %v3472_v25  ;;  %v318_v36 = vshrl.u32 %v317_v30, 23  ;;  %v3876_v43 = vand.u32 8388607, %v314_v29 }
  0x9e   :  { %v3868_v40 = vshll.u32 %v114_v32, 8  ;;  %v3872_v42 = vshll.u32 %v218_v33, 8 }
  0x9f   :  { %vm117_vm0 = vcmp.gt.s32.totalorder %v116_v27, 0  ;;  %vm221_vm1 = vcmp.gt.s32.totalorder %v220_v28, 0  ;;  %v3879_v48 = vadd.s32 4294967169, %v318_v36 }
  0xa0   :  { %v118_v34 = vsel %vm117_vm0, %v116_v27, 0  ;;  %v222_v35 = vsel %vm221_vm1, %v220_v28, 0 }
  0xa1   :  { %v119_v38 = vshrl.u32 %v118_v34, 5  ;;  %v120_v39 = vand.u32 31, %v118_v34  ;;  %v3870_v41 = vshrl.u32 %v222_v35, 5  ;;  %v224_v47 = vand.u32 31, %v222_v35 }
  0xa3   :  { %v121_v44 = vsub.s32 32, %v120_v39  ;;  %v123_v46 = vshll.u32 %v5606_v45, %v120_v39  ;;  %v126_v50 = vshll.u32 %v5595_v49, %v120_v39  ;;  %v129_v52 = vshll.u32 %v5597_v51, %v120_v39 }
  0xa4   :  { %v132_v54 = vshll.u32 %v5599_v53, %v120_v39  ;;  %v135_v56 = vshll.u32 %v5609_v55, %v120_v39  ;;  %vm138_vm2 = vcmp.lt.s32.totalorder %v119_v38, 1  ;;  %vm139_vm3 = vcmp.lt.s32.totalorder %v119_v38, 2 }
  0xa5   :  { %v124_v57 = vshrl.u32 %v5595_v49, %v121_v44  ;;  %v127_v58 = vshrl.u32 %v5597_v51, %v121_v44  ;;  %v130_v59 = vshrl.u32 %v5599_v53, %v121_v44  ;;  %v122_v60 = vshrl.u32 %v5606_v45, %v121_v44 }
  0xa6   :  { %v133_v61 = vshrl.u32 %v5609_v55, %v121_v44  ;;  %v136_v63 = vshrl.u32 %v5601_v62, %v121_v44  ;;  %v225_v3 = vsub.s32 32, %v224_v47  ;;  %vm140_vm4 = vcmp.lt.s32.totalorder %v119_v38, 3 }
  0xa7   :  { %v125_v0 = vor.u32 %v124_v57, %v123_v46  ;;  %v128_v1 = vor.u32 %v127_v58, %v126_v50  ;;  %v131_v2 = vor.u32 %v130_v59, %v129_v52  ;;  %vm141_vm5 = vcmp.lt.s32.totalorder %v119_v38, 4 }
  0xa8   :  { %v134_v4 = vor.u32 %v133_v61, %v132_v54  ;;  %v137_v5 = vor.u32 %v136_v63, %v135_v56  ;;  %v227_v15 = vshll.u32 %v5606_v45, %v224_v47  ;;  %v228_v20 = vshrl.u32 %v5595_v49, %v225_v3 }
  0xa9   :  { %v142_v6 = vsel %vm138_vm2, %v122_v60, %v125_v0  ;;  %v143_v7 = vsel %vm141_vm5, %v131_v2, 2102212464  ;;  %v146_v8 = vsel %vm138_vm2, %v125_v0, %v128_v1  ;;  %v150_v9 = vsel %vm138_vm2, %v128_v1, %v131_v2 }
  0xaa   :  { %v144_v10 = vsel %vm140_vm4, %v128_v1, %v143_v7  ;;  %v147_v11 = vsel %vm141_vm5, %v134_v4, 920167782  ;;  %v151_v14 = vsel %vm141_vm5, %v137_v5, 1326507024  ;;  %v230_v21 = vshll.u32 %v5595_v49, %v224_v47 }
  0xab   :  { %v148_v16 = vsel %vm140_vm4, %v131_v2, %v147_v11  ;;  %v152_v19 = vsel %vm140_vm4, %v134_v4, %v151_v14  ;;  %v145_v23 = vsel %vm139_vm3, %v142_v6, %v144_v10  ;;  %v231_v26 = vshrl.u32 %v5597_v51, %v225_v3 }
  0xac   :  { %v149_v24 = vsel %vm139_vm3, %v146_v8, %v148_v16  ;;  %v153_v25 = vsel %vm139_vm3, %v150_v9, %v152_v19  ;;  %v229_v32 = vor.u32 %v228_v20, %v227_v15  ;;  %v233_v34 = vshll.u32 %v5597_v51, %v224_v47 }
  0xad   :  { %v3902_v27 = vmul.u32.u64.low %v3868_v40, %v153_v25  ;;  %v3903_v28 = vmul.u32.u64.high %v3868_v40, %v153_v25, %v3902_v27  ;;  %v3906_v30 = vmul.u32.u64.low %v3868_v40, %v149_v24  ;;  %v3907_v31 = vmul.u32.u64.high %v3868_v40, %v149_v24, %v3906_v30 }
  0xae   :  { %v232_v33 = vor.u32 %v231_v26, %v230_v21  ;;  %v234_v35 = vshrl.u32 %v5599_v53, %v225_v3  ;;  %v226_v36 = vshrl.u32 %v5606_v45, %v225_v3  ;;  %v236_v38 = vshll.u32 %v5599_v53, %v224_v47 }
  0xaf   :  { %v237_v39 = vshrl.u32 %v5609_v55, %v225_v3  ;;  %v240_v44 = vshrl.u32 %v5601_v62, %v225_v3  ;;  %v161_v46 = vmul.u32 %v3868_v40, %v145_v23  ;;  %v239_v52 = vshll.u32 %v5609_v55, %v224_v47 }
  0xb0   :  { %v235_v50 = vor.u32 %v234_v35, %v233_v34  ;;  %vm242_vm6 = vcmp.lt.s32.totalorder %v3870_v41, 1  ;;  %vm163_vm7 = vc.u32 %v3903_v28, %v3906_v30  ;;  %v164_v54 = vadd.s32 1, %v3907_v31 }
  0xb1   :  { %v238_v56 = vor.u32 %v237_v39, %v236_v38  ;;  %vm243_vm8 = vcmp.lt.s32.totalorder %v3870_v41, 2  ;;  %v241_v57 = vor.u32 %v240_v44, %v239_v52  ;;  %vm244_vm9 = vcmp.lt.s32.totalorder %v3870_v41, 3 }
  0xb2   :  { %vm245_vm10 = vcmp.lt.s32.totalorder %v3870_v41, 4  ;;  %v250_v58 = vsel %vm242_vm6, %v229_v32, %v232_v33  ;;  %v165_v40 = vsel %vm163_vm7, %v164_v54, %v3907_v31  ;;  %v254_v47 = vsel %vm242_vm6, %v232_v33, %v235_v50 }
  0xb3   :  { %v247_v59 = vsel %vm245_vm10, %v235_v50, 2102212464  ;;  %v251_v60 = vsel %vm245_vm10, %v238_v56, 920167782  ;;  %v166_v61 = vadd.s32 %v165_v40, %v161_v46  ;;  %v246_v63 = vsel %vm242_vm6, %v226_v36, %v229_v32 }
  0xb4   :  { %v252_v0 = vsel %vm244_vm9, %v235_v50, %v251_v60  ;;  %v255_v1 = vsel %vm245_vm10, %v241_v57, 1326507024  ;;  %v248_v2 = vsel %vm244_vm9, %v232_v33, %v247_v59  ;;  %v324_v5 = vadd.s32 1, %v3879_v48 }
  0xb5   :  { %v253_v3 = vsel %vm243_vm8, %v250_v58, %v252_v0  ;;  %v256_v4 = vsel %vm244_vm9, %v238_v56, %v255_v1  ;;  %v167_v6 = vadd.s32 536870912, %v166_v61  ;;  %v249_v15 = vsel %vm243_vm8, %v246_v63, %v248_v2 }
  0xb6   :  { %v257_v7 = vsel %vm243_vm8, %v254_v47, %v256_v4  ;;  %v3930_v8 = vmul.u32.u64.low %v3872_v42, %v253_v3  ;;  %v3931_v9 = vmul.u32.u64.high %v3872_v42, %v253_v3, %v3930_v8  ;;  %vm325_vm11 = vcmp.gt.s32.totalorder %v324_v5, 0 }
  0xb7   :  { %v3935_v10 = vmul.u32.u64.low %v3872_v42, %v257_v7  ;;  %v3936_v11 = vmul.u32.u64.high %v3872_v42, %v257_v7, %v3935_v10  ;;  %v168_v14 = vshrl.u32 %v167_v6, 30  ;;  %v326_v16 = vsel %vm325_vm11, %v324_v5, 0 }
  0xb8   :  { %v328_v48 = vand.u32 31, %v326_v16  ;;  %v421_v19 = vand.u32 2139095040, %v3866_v37  ;;  %v268_v21 = vadd.s32 1, %v3931_v9  ;;  %v322_v23 = vor.u32 8388608, %v3876_v43 }
  0xb9   :  { %v169_v20 = vshll.u32 %v168_v14, 30  ;;  %v265_v24 = vmul.u32 %v3872_v42, %v249_v15  ;;  %vm267_vm12 = vc.u32 %v3936_v11, %v3930_v8  ;;  %v418_v26 = vand.u32 2147483647, %v3866_v37 }
  0xba   :  { %v329_v25 = vsub.s32 32, %v328_v48  ;;  %v192_v41 = vsub.s32 4, %v168_v14  ;;  %v269_v31 = vsel %vm267_vm12, %v268_v21, %v3931_v9  ;;  %v422_v33 = vshrl.u32 %v421_v19, 23 }
  0xbb   :  { %v3947_v27 = vsub.s32 %v166_v61, %v169_v20  ;;  %v270_v32 = vadd.s32 %v269_v31, %v265_v24  ;;  %v162_v42 = vadd.s32 %v3906_v30, %v3903_v28  ;;  %v3959_v35 = vshll.u32 %v322_v23, 8 }
  0xbc   :  { %v3961_v38 = vshrl.u32 %v326_v16, 5  ;;  %v332_v39 = vshrl.u32 %v5595_v49, %v329_v25  ;;  %v3966_v44 = vand.u32 8388607, %v418_v26  ;;  %v193_v46 = vsel %vm108_vm13, %v192_v41, %v168_v14 }
  0xbd   :  { %v172_v34 = vsub.s32 0, %v3947_v27  ;;  %v271_v36 = vadd.s32 536870912, %v270_v32  ;;  %v335_v28 = vshrl.u32 %v5597_v51, %v329_v25  ;;  %v338_v30 = vshrl.u32 %v5599_v53, %v329_v25 }
  0xbe   :  { %v331_v52 = vshll.u32 %v5606_v45, %v328_v48  ;;  %v341_v54 = vshrl.u32 %v5609_v55, %v329_v25  ;;  %v3480_v56 = vadd.s32 4294967169, %v422_v33  ;;  %v334_v58 = vshll.u32 %v5595_v49, %v328_v48 }
  0xbf   :  { %v3469_v17 = vmin.u32 %v172_v34, %v3947_v27  ;;  %v272_v50 = vshrl.u32 %v271_v36, 30  ;;  %v337_v40 = vshll.u32 %v5597_v51, %v328_v48  ;;  %v344_v59 = vshrl.u32 %v5601_v62, %v329_v25 }
  0xc0   :  { %v3981_v60 = vsel %vm3953_vm14, 0, %v193_v46  ;;  %v333_v61 = vor.u32 %v332_v39, %v331_v52  ;;  %v340_v63 = vshll.u32 %v5599_v53, %v328_v48  ;;  %v336_v1 = vor.u32 %v335_v28, %v334_v58 }
  0xc1   :  { %v174_v57 = vclz %v3469_v17  ;;  %v273_v47 = vshll.u32 %v272_v50, 30  ;;  %v339_v2 = vor.u32 %v338_v30, %v337_v40  ;;  %v343_v3 = vshll.u32 %v5609_v55, %v328_v48 }
  0xc2   :  { %v296_v5 = vsub.s32 4, %v272_v50  ;;  %v330_v6 = vshrl.u32 %v5606_v45, %v329_v25  ;;  %v342_v7 = vor.u32 %v341_v54, %v340_v63  ;;  %vm346_vm1 = vcmp.lt.s32.totalorder %v3961_v38, 1 }
  0xc3   :  { %v3470_v0 = vadd.s32 4294967294, %v174_v57  ;;  %v3985_v4 = vsub.s32 %v270_v32, %v273_v47  ;;  %v345_v9 = vor.u32 %v344_v59, %v343_v3  ;;  %vm347_vm2 = vcmp.lt.s32.totalorder %v3961_v38, 2 }
  0xc4   :  { %vm3992_vm3 = vcmp.le.f32.partialorder %v210_v18, 0.7853982  ;;  %vm348_vm4 = vcmp.lt.s32.totalorder %v3961_v38, 3  ;;  %vm349_vm5 = vcmp.lt.s32.totalorder %v3961_v38, 4  ;;  %v354_v20 = vsel %vm346_vm1, %v333_v61, %v336_v1 }
  0xc5   :  { %vm3471_vm0 = vcmp.lt.s32.totalorder %v3470_v0, 0  ;;  %v276_v15 = vsub.s32 0, %v3985_v4  ;;  %v351_v19 = vsel %vm349_vm5, %v339_v2, 2102212464  ;;  %v355_v18 = vsel %vm349_vm5, %v342_v7, 920167782 }
  0xc6   :  { %v177_v10 = vsel %vm3471_vm0, 0, %v3470_v0  ;;  %v358_v24 = vsel %vm346_vm1, %v336_v1, %v339_v2  ;;  %v356_v31 = vsel %vm348_vm4, %v339_v2, %v355_v18  ;;  %v359_v32 = vsel %vm349_vm5, %v345_v9, 1326507024  ;;  %v30_v9 = vld [vmem:[#allocation2 + $0x20] sm:$0xff] }
  0xc7   :  { %v178_v16 = vsub.s32 32, %v177_v10  ;;  %v182_v48 = vsub.s32 4294967266, %v177_v10  ;;  %v179_v21 = vshll.u32 %v3947_v27, %v177_v10  ;;  %v3473_v23 = vmin.u32 %v276_v15, %v3985_v4 }
  0xc8   :  { %v297_v34 = vsel %vm212_vm15, %v296_v5, %v272_v50  ;;  %v350_v36 = vsel %vm346_vm1, %v330_v6, %v333_v61  ;;  %v352_v27 = vsel %vm348_vm4, %v336_v1, %v351_v19  ;;  %v360_v46 = vsel %vm348_vm4, %v342_v7, %v359_v32  ;;  %v63_v7 = vpop.permute.xlu1 %62 }
  0xc9   :  { %v180_v25 = vshrl.u32 %v162_v42, %v178_v16  ;;  %v183_v41 = vadd.s32 127, %v182_v48  ;;  %v278_v33 = vclz %v3473_v23  ;;  %v357_v42 = vsel %vm347_vm2, %v354_v20, %v356_v31 }
  0xca   :  { %v361_v30 = vsel %vm347_vm2, %v358_v24, %v360_v46  ;;  %v4020_v50 = vmul.u32.u64.low %v3959_v35, %v357_v42  ;;  %v4021_v52 = vmul.u32.u64.high %v3959_v35, %v357_v42, %v4020_v50  ;;  %v353_v57 = vsel %vm347_vm2, %v350_v36, %v352_v27 }
  0xcb   :  { %v181_v39 = vor.u32 %v180_v25, %v179_v21  ;;  %v184_v17 = vshll.u32 %v183_v41, 23  ;;  %v3474_v28 = vadd.s32 4294967294, %v278_v33  ;;  %v199_v59 = vadd.s32 3, %v3981_v60 }
  0xcc   :  { %v4026_v58 = vmul.u32.u64.low %v3959_v35, %v361_v30  ;;  %v4027_v40 = vmul.u32.u64.high %v3959_v35, %v361_v30, %v4026_v58  ;;  %v266_v47 = vadd.s32 %v3930_v8, %v3936_v11  ;;  %v428_v61 = vadd.s32 1, %v3480_v56  ;;  %v31_v11 = vld [vmem:[#allocation2 + $0x28] sm:$0xff] }
  0xcd   :  { %v185_v54 = vor.u32 4788187, %v184_v17  ;;  %vm3475_vm6 = vcmp.lt.s32.totalorder %v3474_v28, 0  ;;  %v188_v0 = vcvt.s32.f32 %v181_v39  ;;  %v4034_v2 = vsel %vm3992_vm3, 0, %v297_v34 }
  0xce   :  { %v281_v1 = vsel %vm3475_vm6, 0, %v3474_v28  ;;  %v369_v5 = vmul.u32 %v3959_v35, %v353_v57  ;;  %v372_v6 = vadd.s32 1, %v4021_v52  ;;  %vm371_vm7 = vc.u32 %v4027_v40, %v4020_v50 }
  0xcf   :  { %v186_v63 = vand.u32 2147483647, %v185_v54  ;;  %v282_v38 = vsub.s32 32, %v281_v1  ;;  %v286_v3 = vsub.s32 4294967266, %v281_v1  ;;  %v283_v8 = vshll.u32 %v3985_v4, %v281_v1 }
  0xd0   :  { %vm429_vm8 = vcmp.gt.s32.totalorder %v428_v61, 0  ;;  %v373_v16 = vsel %vm371_vm7, %v372_v6, %v4021_v52  ;;  %v303_v20 = vadd.s32 3, %v4034_v2  ;;  %v4042_v23 = vmul.f32 %v63_v7, %v30_v9 }
  0xd1   :  { %v189_v10 = vmul.f32 %v188_v0, %v186_v63  ;;  %v284_v56 = vshrl.u32 %v266_v47, %v282_v38  ;;  %v287_v15 = vadd.s32 127, %v286_v3  ;;  %v430_v48 = vsel %vm429_vm8, %v428_v61, 0 }
  0xd2   :  { %v374_v35 = vadd.s32 %v373_v16, %v369_v5  ;;  %v432_v21 = vand.u32 31, %v430_v48  ;;  %5680 = vst [vmem:[#allocation9_spill] sm:$0xff] %v4042_v23  ;;  %v4044_v25 = vmul.f32 %v63_v7, %v31_v11  ;;  %v4051_v33 = vand.u32 3, %v199_v59 }
  0xd3   :  { %v190_v19 = vxor.u32 2147483648, %v189_v10  ;;  %v285_v18 = vor.u32 %v284_v56, %v283_v8  ;;  %v288_v24 = vshll.u32 %v287_v15, 23  ;;  %vm316_vm9 = vcmp.lt.s32.totalorder %v3858_v22, 0 }
  0xd4   :  { %5681 = vst [vmem:[#allocation10_spill] sm:$0xff] %v4044_v25  ;;  %v375_v41 = vadd.s32 536870912, %v374_v35  ;;  %v433_v31 = vsub.s32 32, %v432_v21  ;;  %v4054_v36 = vand.u32 3, %v303_v20  ;;  %v426_v39 = vor.u32 8388608, %v3966_v44 }
  0xd5   :  { %v191_v4 = vsel %vm108_vm13, %v190_v19, %v189_v10  ;;  %v289_v34 = vor.u32 4788187, %v288_v24  ;;  %v292_v42 = vcvt.s32.f32 %v285_v18  ;;  %v4058_v46 = vadd.s32 %v4020_v50, %v4027_v40 }
  0xd6   :  { %v194_v32 = vsel %vm3953_vm14, %v3850_v12, %v191_v4  ;;  %v376_v27 = vshrl.u32 %v375_v41, 30  ;;  %vm4062_vm10 = vcmp.le.f32.partialorder %v314_v29, 0.7853982  ;;  %v4066_v30 = vshrl.u32 %v430_v48, 5 }
  0xd7   :  { %3673 = vcosq.f32 %v194_v32  ;;  %v290_v17 = vand.u32 2147483647, %v289_v34  ;;  %v436_v52 = vshrl.u32 %v5595_v49, %v433_v31  ;;  %v439_v54 = vshrl.u32 %v5597_v51, %v433_v31 }
  0xd8   :  { %3675 = vsinq.f32 %v194_v32  ;;  %v377_v28 = vshll.u32 %v376_v27, 30  ;;  %v442_v57 = vshrl.u32 %v5599_v53, %v433_v31  ;;  %v444_v58 = vshll.u32 %v5599_v53, %v432_v21 }
  0xd9   :  { %v293_v44 = vmul.f32 %v292_v42, %v290_v17  ;;  %v445_v50 = vshrl.u32 %v5609_v55, %v433_v31  ;;  %vm205_vm11 = vcmp.eq.s32.totalorder %v4051_v33, 2  ;;  %v400_v40 = vsub.s32 4, %v376_v27 }
  0xda   :  { %v4074_v29 = vsub.s32 %v374_v35, %v377_v28  ;;  %v435_v59 = vshll.u32 %v5606_v45, %v432_v21  ;;  %v438_v47 = vshll.u32 %v5595_v49, %v432_v21  ;;  %vm202_vm12 = vcmp.eq.s32.totalorder %v4051_v33, 0 }
  0xdb   :  { %v294_v61 = vxor.u32 2147483648, %v293_v44  ;;  %v441_v63 = vshll.u32 %v5597_v51, %v432_v21  ;;  %v446_v0 = vor.u32 %v445_v50, %v444_v58  ;;  %v448_v1 = vshrl.u32 %v5601_v62, %v433_v31 }
  0xdc   :  { %vm201_vm13 = vcmp.lt.s32.totalorder %v4051_v33, 2  ;;  %v380_v38 = vsub.s32 0, %v4074_v29  ;;  %v437_v3 = vor.u32 %v436_v52, %v435_v59  ;;  %v440_v5 = vor.u32 %v439_v54, %v438_v47 }
  0xdd   :  { %v4083_v6 = vshll.u32 %v426_v39, 8  ;;  %vm198_vm14 = vweird.f32 %v3850_v12  ;;  %v295_v7 = vsel %vm212_vm15, %v294_v61, %v293_v44  ;;  %v443_v9 = vor.u32 %v442_v57, %v441_v63 }
  0xde   :  { %v447_v10 = vshll.u32 %v5609_v55, %v432_v21  ;;  %v525_v8 = vand.u32 2139095040, %v4042_v23  ;;  %v298_v11 = vsel %vm3992_vm3, %v3852_v13, %v295_v7  ;;  %v3477_v56 = vmin.u32 %v380_v38, %v4074_v29 }
  0xdf   :  { %v401_v15 = vsel %vm316_vm9, %v400_v40, %v376_v27  ;;  %vm453_vm0 = vcmp.lt.s32.totalorder %v4066_v30, 4  ;;  %3677 = vcosq.f32 %v298_v11  ;;  %vm450_vm15 = vcmp.lt.s32.totalorder %v4066_v30, 1 }
  0xe0   :  { %v449_v16 = vor.u32 %v448_v1, %v447_v10  ;;  %v459_v48 = vsel %vm453_vm0, %v446_v0, 920167782  ;;  %3679 = vsinq.f32 %v298_v11  ;;  %v382_v20 = vclz %v3477_v56 }
  0xe1   :  { %v4100_v19 = vpop.eup %3673  ;;  %vm452_vm1 = vcmp.lt.s32.totalorder %v4066_v30, 3  ;;  %v458_v14 = vsel %vm450_vm15, %v437_v3, %v440_v5  ;;  %v4110_v18 = vsel %vm4062_vm10, 0, %v401_v15  ;;  %v434_v24 = vshrl.u32 %v5606_v45, %v433_v31 }
  0xe2   :  { %v4105_v35 = vpop.eup %3675  ;;  %v5590_v21 = vxor.u32 2147483648, %v4100_v19  ;;  %v460_v4 = vsel %vm452_vm1, %v443_v9, %v459_v48  ;;  %v3478_v32 = vadd.s32 4294967294, %v382_v20  ;;  %vm451_vm2 = vcmp.lt.s32.totalorder %v4066_v30, 2 }
  0xe3   :  { %v5593_v41 = vxor.u32 2147483648, %v4105_v35  ;;  %v455_v34 = vsel %vm453_vm0, %v443_v9, 2102212464  ;;  %v461_v31 = vsel %vm451_vm2, %v458_v14, %v460_v4  ;;  %v462_v39 = vsel %vm450_vm15, %v440_v5, %v443_v9 }
  0xe4   :  { %v207_v27 = vsel %vm205_vm11, %v5590_v21, %v4105_v35  ;;  %v463_v17 = vsel %vm453_vm0, %v449_v16, 1326507024  ;;  %vm3479_vm3 = vcmp.lt.s32.totalorder %v3478_v32, 0  ;;  %v526_v52 = vshrl.u32 %v525_v8, 23 }
  0xe5   :  { %v204_v42 = vsel %vm202_vm12, %v4100_v19, %v5593_v41  ;;  %v464_v28 = vsel %vm452_vm1, %v446_v0, %v463_v17  ;;  %v385_v44 = vsel %vm3479_vm3, 0, %v3478_v32  ;;  %v454_v57 = vsel %vm450_vm15, %v434_v24, %v437_v3 }
  0xe6   :  { %v208_v54 = vsel %vm201_vm13, %v204_v42, %v207_v27  ;;  %v465_v58 = vsel %vm451_vm2, %v462_v39, %v464_v28  ;;  %vm302_vm4 = vweird.f32 %v3852_v13  ;;  %v386_v40 = vsub.s32 32, %v385_v44 }
  0xe7   :  { %v209_v50 = vsel %vm198_vm14, nan, %v208_v54  ;;  %v390_v59 = vsub.s32 4294967266, %v385_v44  ;;  %v456_v47 = vsel %vm452_vm1, %v440_v5, %v455_v34  ;;  %v387_v1 = vshll.u32 %v4074_v29, %v385_v44 }
  0xe8   :  { %v4149_v33 = vmul.u32.u64.low %v4083_v6, %v465_v58  ;;  %v4150_v61 = vmul.u32.u64.high %v4083_v6, %v465_v58, %v4149_v33  ;;  %v4153_v63 = vmul.u32.u64.low %v4083_v6, %v461_v31  ;;  %v4154_v0 = vmul.u32.u64.high %v4083_v6, %v461_v31, %v4153_v63  ;;  %1770 = vst [vmem:[#allocation5] sm:$0xff] %v209_v50 }
  0xe9   :  { %v388_v38 = vshrl.u32 %v4058_v46, %v386_v40  ;;  %v391_v3 = vadd.s32 127, %v390_v59  ;;  %v3484_v7 = vadd.s32 4294967169, %v526_v52  ;;  %v4159_v9 = vpop.eup %3677  ;;  %vm306_vm5 = vcmp.eq.s32.totalorder %v4054_v36, 0 }
  0xea   :  { %vm309_vm6 = vcmp.eq.s32.totalorder %v4054_v36, 2  ;;  %v457_v5 = vsel %vm451_vm2, %v454_v57, %v456_v47  ;;  %v522_v10 = vand.u32 2147483647, %v4042_v23  ;;  %v4166_v8 = vpop.eup %3679  ;;  %v5588_v11 = vxor.u32 2147483648, %v4159_v9 }
  0xeb   :  { %v389_v29 = vor.u32 %v388_v38, %v387_v1  ;;  %v392_v56 = vshll.u32 %v391_v3, 23  ;;  %v532_v46 = vadd.s32 1, %v3484_v7  ;;  %v5589_v15 = vxor.u32 2147483648, %v4166_v8 }
  0xec   :  { %v407_v16 = vadd.s32 3, %v4110_v18  ;;  %vm475_vm7 = vc.u32 %v4150_v61, %v4153_v63  ;;  %v476_v48 = vadd.s32 1, %v4154_v0  ;;  %v311_v30 = vsel %vm309_vm6, %v5588_v11, %v4166_v8 }
  0xed   :  { %v393_v20 = vor.u32 4788187, %v392_v56  ;;  %v473_v14 = vmul.u32 %v4083_v6, %v457_v5  ;;  %vm533_vm8 = vcmp.gt.s32.totalorder %v532_v46, 0  ;;  %vm305_vm11 = vcmp.lt.s32.totalorder %v4054_v36, 2 }
  0xee   :  { %v308_v24 = vsel %vm306_vm5, %v4159_v9, %v5589_v15  ;;  %v477_v4 = vsel %vm475_vm7, %v476_v48, %v4154_v0  ;;  %v534_v32 = vsel %vm533_vm8, %v532_v46, 0  ;;  %v396_v31 = vcvt.s32.f32 %v389_v29 }
  0xef   :  { %v312_v34 = vsel %vm305_vm11, %v308_v24, %v311_v30  ;;  %v394_v27 = vand.u32 2147483647, %v393_v20  ;;  %v478_v39 = vadd.s32 %v477_v4, %v473_v14  ;;  %v536_v6 = vand.u32 31, %v534_v32 }
  0xf0   :  { %v313_v17 = vsel %vm302_vm4, nan, %v312_v34  ;;  %v4187_v28 = vand.u32 3, %v407_v16  ;;  %v529_v36 = vand.u32 8388607, %v522_v10  ;;  %v535_v54 = vshrl.u32 %v534_v32, 5 }
  0xf1   :  { %v397_v42 = vmul.f32 %v396_v31, %v394_v27  ;;  %v479_v52 = vadd.s32 536870912, %v478_v39  ;;  %1771 = vst [vmem:[#allocation5 + $0x8] sm:$0xff] %v313_v17  ;;  %v537_v44 = vsub.s32 32, %v536_v6  ;;  %v629_v57 = vand.u32 2139095040, %v4044_v25 }
  0xf2   :  { %v539_v40 = vshll.u32 %v5606_v45, %v536_v6  ;;  %v542_v59 = vshll.u32 %v5595_v49, %v536_v6  ;;  %v545_v0 = vshll.u32 %v5597_v51, %v536_v6  ;;  %v548_v7 = vshll.u32 %v5599_v53, %v536_v6 }
  0xf3   :  { %v398_v58 = vxor.u32 2147483648, %v397_v42  ;;  %v4192_v50 = vshrl.u32 %v479_v52, 30  ;;  %v540_v47 = vshrl.u32 %v5595_v49, %v537_v44  ;;  %v543_v33 = vshrl.u32 %v5597_v51, %v537_v44 }
  0xf4   :  { %v546_v1 = vshrl.u32 %v5599_v53, %v537_v44  ;;  %v549_v5 = vshrl.u32 %v5609_v55, %v537_v44  ;;  %v530_v30 = vor.u32 8388608, %v529_v36  ;;  %v551_v14 = vshll.u32 %v5609_v55, %v536_v6 }
  0xf5   :  { %v399_v38 = vsel %vm316_vm9, %v398_v58, %v397_v42  ;;  %v481_v3 = vshll.u32 %v4192_v50, 30  ;;  %v541_v56 = vor.u32 %v540_v47, %v539_v40  ;;  %v544_v46 = vor.u32 %v543_v33, %v542_v59 }
  0xf6   :  { %v402_v29 = vsel %vm4062_vm10, %v3858_v22, %v399_v38  ;;  %v547_v16 = vor.u32 %v546_v1, %v545_v0  ;;  %v550_v20 = vor.u32 %v549_v5, %v548_v7  ;;  %v552_v24 = vshrl.u32 %v5601_v62, %v537_v44 }
  0xf7   :  { %3681 = vcosq.f32 %v402_v29  ;;  %v4208_v48 = vsub.s32 %v478_v39, %v481_v3  ;;  %v630_v4 = vshrl.u32 %v629_v57, 23  ;;  %vm554_vm9 = vcmp.lt.s32.totalorder %v535_v54, 1 }
  0xf8   :  { %3683 = vsinq.f32 %v402_v29  ;;  %vm556_vm12 = vcmp.lt.s32.totalorder %v535_v54, 3  ;;  %vm557_vm13 = vcmp.lt.s32.totalorder %v535_v54, 4  ;;  %v553_v43 = vor.u32 %v552_v24, %v551_v14 }
  0xf9   :  { %v484_v32 = vsub.s32 0, %v4208_v48  ;;  %v559_v34 = vsel %vm557_vm13, %v547_v16, 2102212464  ;;  %v562_v27 = vsel %vm554_vm9, %v541_v56, %v544_v46  ;;  %v563_v31 = vsel %vm557_vm13, %v550_v20, 920167782 }
  0xfa   :  { %v538_v17 = vshrl.u32 %v5606_v45, %v537_v44  ;;  %vm555_vm10 = vcmp.lt.s32.totalorder %v535_v54, 2  ;;  %v564_v6 = vsel %vm556_vm12, %v547_v16, %v563_v31  ;;  %v566_v52 = vsel %vm554_vm9, %v544_v46, %v547_v16 }
  0xfb   :  { %v3481_v39 = vmin.u32 %v484_v32, %v4208_v48  ;;  %v565_v42 = vsel %vm555_vm10, %v562_v27, %v564_v6  ;;  %v567_v36 = vsel %vm557_vm13, %v553_v43, 1326507024  ;;  %v570_v57 = vshll.u32 %v530_v30, 8  ;;  %v4267_v6 = vpop.permute.xlu0 %72 }
  0xfc   :  { %vm420_vm0 = vcmp.lt.s32.totalorder %v3866_v37, 0  ;;  %v558_v40 = vsel %vm554_vm9, %v538_v17, %v541_v56  ;;  %v560_v59 = vsel %vm556_vm12, %v544_v46, %v559_v34  ;;  %vm406_vm15 = vweird.f32 %v3858_v22  ;;  %v68_v17 = vpop.permute.xlu1 %67 }
  0xfd   :  { %v486_v58 = vclz %v3481_v39  ;;  %vm4225_vm1 = vcmp.le.f32.partialorder %v418_v26, 0.7853982  ;;  %v504_v47 = vsub.s32 4, %v4192_v50  ;;  %v568_v33 = vsel %vm556_vm12, %v550_v20, %v567_v36 }
  0xfe   :  { %v4231_v0 = vmul.u32.u64.low %v570_v57, %v565_v42  ;;  %v4232_v1 = vmul.u32.u64.high %v570_v57, %v565_v42, %v4231_v0  ;;  %vm409_vm2 = vcmp.lt.s32.totalorder %v4187_v28, 2  ;;  %v569_v3 = vsel %vm555_vm10, %v566_v52, %v568_v33  ;;  %v32_v42 = vld [vmem:[#allocation2 + $0x30] sm:$0xff]  ;;  %v33_v52 = vld [vmem:[#allocation2 + $0x38] sm:$0xff] }
  0xff   :  { %v3482_v38 = vadd.s32 4294967294, %v486_v58  ;;  %v3488_v7 = vadd.s32 4294967169, %v630_v4  ;;  %vm410_vm3 = vcmp.eq.s32.totalorder %v4187_v28, 0  ;;  %v561_v26 = vsel %vm555_vm10, %v558_v40, %v560_v59 }
 0x100   :  { %v4239_v5 = vmul.u32.u64.low %v570_v57, %v569_v3  ;;  %v4240_v29 = vmul.u32.u64.high %v570_v57, %v569_v3, %v4239_v5  ;;  %vm413_vm5 = vcmp.eq.s32.totalorder %v4187_v28, 2  ;;  %v474_v46 = vadd.s32 %v4153_v63, %v4150_v61 }
 0x101   :  { %v4242_v56 = vpop.eup %3681  ;;  %vm3483_vm6 = vcmp.lt.s32.totalorder %v3482_v38, 0  ;;  %v636_v16 = vadd.s32 1, %v3488_v7  ;;  %v505_v54 = vsel %vm420_vm0, %v504_v47, %v4192_v50  ;;  %v580_v24 = vadd.s32 1, %v4232_v1 }
 0x102   :  { %v4247_v30 = vpop.eup %3683  ;;  %v5584_v20 = vxor.u32 2147483648, %v4242_v56  ;;  %v489_v14 = vsel %vm3483_vm6, 0, %v3482_v38  ;;  %v577_v34 = vmul.u32 %v570_v57, %v561_v26  ;;  %vm579_vm7 = vc.u32 %v4240_v29, %v4231_v0 }
 0x103   :  { %v5587_v4 = vxor.u32 2147483648, %v4247_v30  ;;  %v490_v32 = vsub.s32 32, %v489_v14  ;;  %v494_v43 = vsub.s32 4294967266, %v489_v14  ;;  %v491_v63 = vshll.u32 %v4208_v48, %v489_v14  ;;  %v34_v48 = vld [vmem:[#allocation2 + $0x40] sm:$0xff] }
 0x104   :  { %v415_v61 = vsel %vm413_vm5, %v5584_v20, %v4247_v30  ;;  %vm637_vm8 = vcmp.gt.s32.totalorder %v636_v16, 0  ;;  %v581_v39 = vsel %vm579_vm7, %v580_v24, %v4232_v1  ;;  %v626_v58 = vand.u32 2147483647, %v4044_v25 }
 0x105   :  { %v412_v50 = vsel %vm410_vm3, %v4242_v56, %v5587_v4  ;;  %v492_v27 = vshrl.u32 %v474_v46, %v490_v32  ;;  %v495_v31 = vadd.s32 127, %v494_v43  ;;  %v582_v57 = vadd.s32 %v581_v39, %v577_v34 }
 0x106   :  { %v416_v36 = vsel %vm409_vm2, %v412_v50, %v415_v61  ;;  %v638_v40 = vsel %vm637_vm8, %v636_v16, 0  ;;  %v4276_v1 = vsel %vm4225_vm1, 0, %v505_v54  ;;  %v4278_v7 = vmul.f32 %v68_v17, %v32_v42 }
 0x107   :  { %v417_v59 = vsel %vm406_vm15, nan, %v416_v36  ;;  %v493_v47 = vor.u32 %v492_v27, %v491_v63  ;;  %v496_v33 = vshll.u32 %v495_v31, 23  ;;  %v583_v38 = vadd.s32 536870912, %v582_v57 }
 0x108   :  { %v640_v3 = vand.u32 31, %v638_v40  ;;  %1772 = vst [vmem:[#allocation5 + $0x10] sm:$0xff] %v417_v59  ;;  %5686 = vst [vmem:[#allocation11_spill] sm:$0xff] %v4278_v7  ;;  %v4280_v28 = vmul.f32 %v68_v17, %v33_v52  ;;  %v4283_v26 = vmul.f32 %v4267_v6, %v34_v48  ;;  %v511_v46 = vadd.s32 3, %v4276_v1 }
 0x109   :  { %v497_v5 = vor.u32 4788187, %v496_v33  ;;  %v4286_v16 = vshrl.u32 %v583_v38, 30  ;;  %v633_v14 = vand.u32 8388607, %v626_v58  ;;  %v500_v32 = vcvt.s32.f32 %v493_v47 }
 0x10a   :  { %5687 = vst [vmem:[#allocation12_spill] sm:$0xff] %v4280_v28  ;;  %5688 = vst [vmem:[#allocation13_spill] sm:$0xff] %v4283_v26  ;;  %v641_v54 = vsub.s32 32, %v640_v3  ;;  %v4290_v43 = vshrl.u32 %v638_v40, 5  ;;  %v643_v34 = vshll.u32 %v5606_v45, %v640_v3  ;;  %v646_v50 = vshll.u32 %v5595_v49, %v640_v3 }
 0x10b   :  { %v498_v24 = vand.u32 2147483647, %v497_v5  ;;  %v585_v61 = vshll.u32 %v4286_v16, 30  ;;  %v649_v27 = vshll.u32 %v5597_v51, %v640_v3  ;;  %v4300_v52 = vand.u32 3, %v511_v46 }
 0x10c   :  { %v644_v63 = vshrl.u32 %v5595_v49, %v641_v54  ;;  %v647_v39 = vshrl.u32 %v5597_v51, %v641_v54  ;;  %v650_v17 = vshrl.u32 %v5599_v53, %v641_v54  ;;  %v653_v42 = vshrl.u32 %v5609_v55, %v641_v54 }
 0x10d   :  { %v501_v31 = vmul.f32 %v500_v32, %v498_v24  ;;  %v4302_v48 = vsub.s32 %v582_v57, %v585_v61  ;;  %v652_v36 = vshll.u32 %v5599_v53, %v640_v3  ;;  %v656_v40 = vshrl.u32 %v5601_v62, %v641_v54 }
 0x10e   :  { %v645_v47 = vor.u32 %v644_v63, %v643_v34  ;;  %v648_v33 = vor.u32 %v647_v39, %v646_v50  ;;  %v651_v38 = vor.u32 %v650_v17, %v649_v27  ;;  %v634_v24 = vor.u32 8388608, %v633_v14 }
 0x10f   :  { %v502_v59 = vxor.u32 2147483648, %v501_v31  ;;  %v588_v5 = vsub.s32 0, %v4302_v48  ;;  %v654_v32 = vor.u32 %v653_v42, %v652_v36  ;;  %v655_v20 = vshll.u32 %v5609_v55, %v640_v3 }
 0x110   :  { %v642_v57 = vshrl.u32 %v5606_v45, %v641_v54  ;;  %vm658_vm11 = vcmp.lt.s32.totalorder %v4290_v43, 1  ;;  %v733_v61 = vand.u32 2139095040, %v4278_v7  ;;  %vm661_vm9 = vcmp.lt.s32.totalorder %v4290_v43, 4 }
 0x111   :  { %v503_v46 = vsel %vm420_vm0, %v502_v59, %v501_v31  ;;  %v3485_v63 = vmin.u32 %v588_v5, %v4302_v48  ;;  %v657_v50 = vor.u32 %v656_v40, %v655_v20  ;;  %v663_v3 = vsel %vm661_vm9, %v651_v38, 2102212464 }
 0x112   :  { %v506_v34 = vsel %vm4225_vm1, %v3866_v37, %v503_v46  ;;  %v666_v14 = vsel %vm658_vm11, %v645_v47, %v648_v33  ;;  %v667_v54 = vsel %vm661_vm9, %v654_v32, 920167782  ;;  %vm660_vm12 = vcmp.lt.s32.totalorder %v4290_v43, 3 }
 0x113   :  { %3685 = vcosq.f32 %v506_v34  ;;  %v590_v27 = vclz %v3485_v63  ;;  %v674_v44 = vshll.u32 %v634_v24, 8  ;;  %vm659_vm13 = vcmp.lt.s32.totalorder %v4290_v43, 2 }
 0x114   :  { %3687 = vsinq.f32 %v506_v34  ;;  %v662_v20 = vsel %vm658_vm11, %v642_v57, %v645_v47  ;;  %v668_v31 = vsel %vm660_vm12, %v651_v38, %v667_v54  ;;  %v670_v39 = vsel %vm658_vm11, %v648_v33, %v651_v38 }
 0x115   :  { %vm4332_vm10 = vcmp.le.f32.partialorder %v522_v10, 0.7853982  ;;  %v3486_v42 = vadd.s32 4294967294, %v590_v27  ;;  %v664_v36 = vsel %vm660_vm12, %v648_v33, %v663_v3  ;;  %v669_v40 = vsel %vm659_vm13, %v666_v14, %v668_v31 }
 0x116   :  { %v671_v59 = vsel %vm661_vm9, %v657_v50, 1326507024  ;;  %v4340_v47 = vmul.u32.u64.low %v674_v44, %v669_v40  ;;  %v4341_v24 = vmul.u32.u64.high %v674_v44, %v669_v40, %v4340_v47  ;;  %v734_v38 = vshrl.u32 %v733_v61, 23 }
 0x117   :  { %v672_v5 = vsel %vm660_vm12, %v654_v32, %v671_v59  ;;  %vm3487_vm0 = vcmp.lt.s32.totalorder %v3486_v42, 0  ;;  %v608_v10 = vsub.s32 4, %v4286_v16  ;;  %v730_v33 = vand.u32 2147483647, %v4278_v7 }
 0x118   :  { %v673_v46 = vsel %vm659_vm13, %v670_v39, %v672_v5  ;;  %v593_v57 = vsel %vm3487_vm0, 0, %v3486_v42  ;;  %v3492_v3 = vadd.s32 4294967169, %v734_v38  ;;  %vm510_vm1 = vweird.f32 %v3866_v37 }
 0x119   :  { %v4348_v34 = vmul.u32.u64.low %v674_v44, %v673_v46  ;;  %v4349_v63 = vmul.u32.u64.high %v674_v44, %v673_v46, %v4348_v34  ;;  %v578_v32 = vadd.s32 %v4231_v0, %v4240_v29  ;;  %v594_v50 = vsub.s32 32, %v593_v57 }
 0x11a   :  { %v598_v61 = vsub.s32 4294967266, %v593_v57  ;;  %v665_v14 = vsel %vm659_vm13, %v662_v20, %v664_v36  ;;  %vm517_vm2 = vcmp.eq.s32.totalorder %v4300_v52, 2  ;;  %vm524_vm3 = vcmp.lt.s32.totalorder %v4042_v23, 0 }
 0x11b   :  { %v684_v54 = vadd.s32 1, %v4341_v24  ;;  %v740_v27 = vadd.s32 1, %v3492_v3  ;;  %v595_v31 = vshll.u32 %v4302_v48, %v593_v57  ;;  %v596_v39 = vshrl.u32 %v578_v32, %v594_v50 }
 0x11c   :  { %v599_v42 = vadd.s32 127, %v598_v61  ;;  %v609_v0 = vsel %vm524_vm3, %v608_v10, %v4286_v16  ;;  %v681_v40 = vmul.u32 %v674_v44, %v665_v14  ;;  %vm683_vm5 = vc.u32 %v4349_v63, %v4340_v47 }
 0x11d   :  { %v4363_v29 = vpop.eup %3685  ;;  %v737_v43 = vand.u32 8388607, %v730_v33  ;;  %vm741_vm6 = vcmp.gt.s32.totalorder %v740_v27, 0  ;;  %v597_v36 = vor.u32 %v596_v39, %v595_v31  ;;  %v685_v5 = vsel %vm683_vm5, %v684_v54, %v4341_v24 }
 0x11e   :  { %v4369_v20 = vpop.eup %3687  ;;  %v5585_v48 = vxor.u32 2147483648, %v4363_v29  ;;  %v600_v59 = vshll.u32 %v599_v42, 23  ;;  %v4376_v44 = vsel %vm4332_vm10, 0, %v609_v0  ;;  %v686_v38 = vadd.s32 %v685_v5, %v681_v40 }
 0x11f   :  { %v5586_v16 = vxor.u32 2147483648, %v4369_v20  ;;  %v742_v10 = vsel %vm741_vm6, %v740_v27, 0  ;;  %vm514_vm7 = vcmp.eq.s32.totalorder %v4300_v52, 0  ;;  %v837_v34 = vand.u32 2139095040, %v4280_v28 }
 0x120   :  { %v519_v46 = vsel %vm517_vm2, %v5585_v48, %v4369_v20  ;;  %v601_v57 = vor.u32 4788187, %v600_v59  ;;  %vm513_vm8 = vcmp.lt.s32.totalorder %v4300_v52, 2  ;;  %v687_v3 = vadd.s32 536870912, %v686_v38 }
 0x121   :  { %v516_v24 = vsel %vm514_vm7, %v4363_v29, %v5586_v16  ;;  %v744_v32 = vand.u32 31, %v742_v10  ;;  %v604_v14 = vcvt.s32.f32 %v597_v36  ;;  %v615_v54 = vadd.s32 3, %v4376_v44 }
 0x122   :  { %v520_v50 = vsel %vm513_vm8, %v516_v24, %v519_v46  ;;  %v602_v61 = vand.u32 2147483647, %v601_v57  ;;  %v4392_v31 = vshrl.u32 %v687_v3, 30  ;;  %v738_v39 = vor.u32 8388608, %v737_v43 }
 0x123   :  { %v521_v27 = vsel %vm510_vm1, nan, %v520_v50  ;;  %v745_v42 = vsub.s32 32, %v744_v32  ;;  %v743_v52 = vshrl.u32 %v742_v10, 5  ;;  %v747_v40 = vshll.u32 %v5606_v45, %v744_v32 }
 0x124   :  { %v605_v0 = vmul.f32 %v604_v14, %v602_v61  ;;  %v838_v59 = vshrl.u32 %v837_v34, 23  ;;  %1773 = vst [vmem:[#allocation5 + $0x18] sm:$0xff] %v521_v27  ;;  %v689_v5 = vshll.u32 %v4392_v31, 30  ;;  %v750_v36 = vshll.u32 %v5595_v49, %v744_v32 }
 0x125   :  { %v748_v46 = vshrl.u32 %v5595_v49, %v745_v42  ;;  %v753_v57 = vshll.u32 %v5597_v51, %v744_v32  ;;  %v751_v3 = vshrl.u32 %v5597_v51, %v745_v42  ;;  %v754_v43 = vshrl.u32 %v5599_v53, %v745_v42 }
 0x126   :  { %v606_v24 = vxor.u32 2147483648, %v605_v0  ;;  %v757_v50 = vshrl.u32 %v5609_v55, %v745_v42  ;;  %v4402_v10 = vand.u32 3, %v615_v54  ;;  %v4404_v61 = vsub.s32 %v686_v38, %v689_v5 }
 0x127   :  { %v756_v34 = vshll.u32 %v5599_v53, %v744_v32  ;;  %v4407_v14 = vshll.u32 %v738_v39, 8  ;;  %v749_v48 = vor.u32 %v748_v46, %v747_v40  ;;  %v752_v16 = vor.u32 %v751_v3, %v750_v36 }
 0x128   :  { %v607_v27 = vsel %vm524_vm3, %v606_v24, %v605_v0  ;;  %v755_v4 = vor.u32 %v754_v43, %v753_v57  ;;  %v692_v15 = vsub.s32 0, %v4404_v61  ;;  %v3496_v21 = vadd.s32 4294967169, %v838_v59 }
 0x129   :  { %v610_v11 = vsel %vm4332_vm10, %v4042_v23, %v607_v27  ;;  %v758_v54 = vor.u32 %v757_v50, %v756_v34  ;;  %v759_v38 = vshll.u32 %v5609_v55, %v744_v32  ;;  %v760_v39 = vshrl.u32 %v5601_v62, %v745_v42 }
 0x12a   :  { %3689 = vcosq.f32 %v610_v11  ;;  %vm762_vm11 = vcmp.lt.s32.totalorder %v743_v52, 1  ;;  %vm628_vm9 = vcmp.lt.s32.totalorder %v4044_v25, 0  ;;  %v3489_v0 = vmin.u32 %v692_v15, %v4404_v61 }
 0x12b   :  { %3691 = vsinq.f32 %v610_v11  ;;  %v746_v40 = vshrl.u32 %v5606_v45, %v745_v42  ;;  %vm765_vm12 = vcmp.lt.s32.totalorder %v743_v52, 4  ;;  %v761_v17 = vor.u32 %v760_v39, %v759_v38 }
 0x12c   :  { %v767_v5 = vsel %vm765_vm12, %v755_v4, 2102212464  ;;  %v770_v46 = vsel %vm762_vm11, %v749_v48, %v752_v16  ;;  %v771_v36 = vsel %vm765_vm12, %v758_v54, 920167782  ;;  %v694_v59 = vclz %v3489_v0 }
 0x12d   :  { %vm763_vm13 = vcmp.lt.s32.totalorder %v743_v52, 2  ;;  %vm764_vm10 = vcmp.lt.s32.totalorder %v743_v52, 3  ;;  %v766_v32 = vsel %vm762_vm11, %v746_v40, %v749_v48  ;;  %v774_v11 = vsel %vm762_vm11, %v752_v16, %v755_v4 }
 0x12e   :  { %v768_v57 = vsel %vm764_vm10, %v752_v16, %v767_v5  ;;  %v772_v24 = vsel %vm764_vm10, %v755_v4, %v771_v36  ;;  %v775_v3 = vsel %vm765_vm12, %v761_v17, 1326507024  ;;  %vm4425_vm0 = vcmp.le.f32.partialorder %v626_v58, 0.7853982 }
 0x12f   :  { %v3490_v42 = vadd.s32 4294967294, %v694_v59  ;;  %v773_v43 = vsel %vm763_vm13, %v770_v46, %v772_v24  ;;  %v776_v50 = vsel %vm764_vm10, %v758_v54, %v775_v3  ;;  %vm617_vm2 = vcmp.lt.s32.totalorder %v4402_v10, 2 }
 0x130   :  { %v712_v34 = vsub.s32 4, %v4392_v31  ;;  %v777_v48 = vsel %vm763_vm13, %v774_v11, %v776_v50  ;;  %v4434_v27 = vmul.u32.u64.low %v4407_v14, %v773_v43  ;;  %v4435_v4 = vmul.u32.u64.high %v4407_v14, %v773_v43, %v4434_v27 }
 0x131   :  { %vm3491_vm3 = vcmp.lt.s32.totalorder %v3490_v42, 0  ;;  %v769_v58 = vsel %vm763_vm13, %v766_v32, %v768_v57  ;;  %v4440_v16 = vmul.u32.u64.low %v4407_v14, %v777_v48  ;;  %v4441_v38 = vmul.u32.u64.high %v4407_v14, %v777_v48, %v4440_v16 }
 0x132   :  { %vm618_vm5 = vcmp.eq.s32.totalorder %v4402_v10, 0  ;;  %v697_v54 = vsel %vm3491_vm3, 0, %v3490_v42  ;;  %v5594_v39 = vand.u32 2147483647, %v4280_v28  ;;  %v844_v0 = vadd.s32 1, %v3496_v21 }
 0x133   :  { %vm621_vm6 = vcmp.eq.s32.totalorder %v4402_v10, 2  ;;  %v682_v40 = vadd.s32 %v4340_v47, %v4349_v63  ;;  %v698_v17 = vsub.s32 32, %v697_v54  ;;  %v702_v5 = vsub.s32 4294967266, %v697_v54 }
 0x134   :  { %v4448_v46 = vpop.eup %3689  ;;  %v713_v52 = vsel %vm628_vm9, %v712_v34, %v4392_v31  ;;  %v785_v36 = vmul.u32 %v4407_v14, %v769_v58  ;;  %v788_v59 = vadd.s32 1, %v4435_v4  ;;  %vm845_vm7 = vcmp.gt.s32.totalorder %v844_v0, 0 }
 0x135   :  { %v4455_v32 = vpop.eup %3691  ;;  %v5591_v21 = vxor.u32 2147483648, %v4448_v46  ;;  %v699_v57 = vshll.u32 %v4404_v61, %v697_v54  ;;  %v700_v47 = vshrl.u32 %v682_v40, %v698_v17  ;;  %v703_v63 = vadd.s32 127, %v702_v5 }
 0x136   :  { %v5592_v24 = vxor.u32 2147483648, %v4455_v32  ;;  %vm787_vm8 = vc.u32 %v4441_v38, %v4434_v27  ;;  %v841_v31 = vand.u32 8388607, %v5594_v39  ;;  %v846_v14 = vsel %vm845_vm7, %v844_v0, 0 }
 0x137   :  { %v623_v11 = vsel %vm621_vm6, %v5591_v21, %v4455_v32  ;;  %v701_v3 = vor.u32 %v700_v47, %v699_v57  ;;  %v704_v42 = vshll.u32 %v703_v63, 23  ;;  %v789_v61 = vsel %vm787_vm8, %v788_v59, %v4435_v4  ;;  %v35_v47 = vld [vmem:[#allocation2 + $0x48] sm:$0xff] }
 0x138   :  { %v620_v43 = vsel %vm618_vm5, %v4448_v46, %v5592_v24  ;;  %v4477_v50 = vsel %vm4425_vm0, 0, %v713_v52  ;;  %v790_v34 = vadd.s32 %v789_v61, %v785_v36  ;;  %v848_v48 = vand.u32 31, %v846_v14 }
 0x139   :  { %5693 = vst [vmem:[#allocation14_spill] sm:$0xff] %v4477_v50  ;;  %vm614_vm11 = vweird.f32 %v4042_v23  ;;  %v624_v58 = vsel %vm617_vm2, %v620_v43, %v623_v11  ;;  %v705_v16 = vor.u32 4788187, %v704_v42  ;;  %v708_v17 = vcvt.s32.f32 %v701_v3 }
 0x13a   :  { %v625_v4 = vsel %vm614_vm11, nan, %v624_v58  ;;  %v791_v54 = vadd.s32 536870912, %v790_v34  ;;  %v849_v0 = vsub.s32 32, %v848_v48  ;;  %v719_v5 = vadd.s32 3, %v4477_v50 }
 0x13b   :  { %v706_v40 = vand.u32 2147483647, %v705_v16  ;;  %v842_v59 = vor.u32 8388608, %v841_v31  ;;  %1774 = vst [vmem:[#allocation5 + $0x20] sm:$0xff] %v625_v4  ;;  %v847_v36 = vshrl.u32 %v846_v14, 5  ;;  %v941_v10 = vand.u32 2139095040, %v4283_v26 }
 0x13c   :  { %v4485_v52 = vshrl.u32 %v791_v54, 30  ;;  %v852_v57 = vshrl.u32 %v5595_v49, %v849_v0  ;;  %v855_v11 = vshrl.u32 %v5597_v51, %v849_v0  ;;  %v858_v42 = vshrl.u32 %v5599_v53, %v849_v0 }
 0x13d   :  { %v709_v63 = vmul.f32 %v708_v17, %v706_v40  ;;  %v861_v61 = vshrl.u32 %v5609_v55, %v849_v0  ;;  %v851_v31 = vshll.u32 %v5606_v45, %v848_v48  ;;  %v854_v43 = vshll.u32 %v5595_v49, %v848_v48 }
 0x13e   :  { %v793_v3 = vshll.u32 %v4485_v52, 30  ;;  %v857_v14 = vshll.u32 %v5597_v51, %v848_v48  ;;  %v860_v16 = vshll.u32 %v5599_v53, %v848_v48  ;;  %v863_v4 = vshll.u32 %v5609_v55, %v848_v48 }
 0x13f   :  { %v710_v58 = vxor.u32 2147483648, %v709_v63  ;;  %v864_v54 = vshrl.u32 %v5601_v62, %v849_v0  ;;  %v4500_v40 = vmul.f32 %v4267_v6, %v35_v47  ;;  %v853_v21 = vor.u32 %v852_v57, %v851_v31 }
 0x140   :  { %v4502_v17 = vsub.s32 %v790_v34, %v793_v3  ;;  %v859_v24 = vor.u32 %v858_v42, %v857_v14  ;;  %v856_v39 = vor.u32 %v855_v11, %v854_v43  ;;  %v862_v49 = vor.u32 %v861_v61, %v860_v16 }
 0x141   :  { %5694 = vst [vmem:[#allocation15_spill] sm:$0xff] %v4500_v40  ;;  %v711_v41 = vsel %vm628_vm9, %v710_v58, %v709_v63  ;;  %v865_v51 = vor.u32 %v864_v54, %v863_v4  ;;  %v4509_v48 = vand.u32 3, %v719_v5  ;;  %v882_v6 = vshll.u32 %v842_v59, 8 }
 0x142   :  { %v714_v53 = vsel %vm4425_vm0, %v4044_v25, %v711_v41  ;;  %v796_v62 = vsub.s32 0, %v4502_v17  ;;  %vm732_vm12 = vcmp.lt.s32.totalorder %v4278_v7, 0  ;;  %v850_v34 = vshrl.u32 %v5606_v45, %v849_v0 }
 0x143   :  { %3693 = vcosq.f32 %v714_v53  ;;  %vm869_vm13 = vcmp.lt.s32.totalorder %v847_v36, 4  ;;  %v942_v57 = vshrl.u32 %v941_v10, 23  ;;  %vm866_vm9 = vcmp.lt.s32.totalorder %v847_v36, 1 }
 0x144   :  { %3695 = vsinq.f32 %v714_v53  ;;  %v3493_v47 = vmin.u32 %v796_v62, %v4502_v17  ;;  %v871_v63 = vsel %vm869_vm13, %v859_v24, 2102212464  ;;  %v874_v11 = vsel %vm866_vm9, %v853_v21, %v856_v39 }
 0x145   :  { %v875_v15 = vsel %vm869_vm13, %v862_v49, 920167782  ;;  %v878_v41 = vsel %vm866_vm9, %v856_v39, %v859_v24  ;;  %v879_v5 = vsel %vm869_vm13, %v865_v51, 1326507024  ;;  %vm4517_vm10 = vcmp.le.f32.partialorder %v730_v33, 0.7853982 }
 0x146   :  { %v798_v42 = vclz %v3493_v47  ;;  %vm867_vm0 = vcmp.lt.s32.totalorder %v847_v36, 2  ;;  %vm868_vm2 = vcmp.lt.s32.totalorder %v847_v36, 3  ;;  %v870_v0 = vsel %vm866_vm9, %v850_v34, %v853_v21 }
 0x147   :  { %v872_v10 = vsel %vm868_vm2, %v856_v39, %v871_v63  ;;  %v876_v53 = vsel %vm868_vm2, %v859_v24, %v875_v15  ;;  %v880_v61 = vsel %vm868_vm2, %v862_v49, %v879_v5  ;;  %v3500_v62 = vadd.s32 4294967169, %v942_v57 }
 0x148   :  { %v3494_v3 = vadd.s32 4294967294, %v798_v42  ;;  %v816_v31 = vsub.s32 4, %v4485_v52  ;;  %v877_v43 = vsel %vm867_vm0, %v874_v11, %v876_v53  ;;  %v881_v14 = vsel %vm867_vm0, %v878_v41, %v880_v61 }
 0x149   :  { %v4522_v51 = vmul.u32.u64.low %v882_v6, %v881_v14  ;;  %v4523_v58 = vmul.u32.u64.high %v882_v6, %v881_v14, %v4522_v51  ;;  %v4525_v33 = vmul.u32.u64.low %v882_v6, %v877_v43  ;;  %v4526_v16 = vmul.u32.u64.high %v882_v6, %v877_v43, %v4525_v33 }
 0x14a   :  { %vm722_vm3 = vcmp.eq.s32.totalorder %v4509_v48, 0  ;;  %vm3495_vm5 = vcmp.lt.s32.totalorder %v3494_v3, 0  ;;  %v873_v21 = vsel %vm867_vm0, %v870_v0, %v872_v10  ;;  %v948_v39 = vadd.s32 1, %v3500_v62 }
 0x14b   :  { %vm725_vm6 = vcmp.eq.s32.totalorder %v4509_v48, 2  ;;  %v786_v49 = vadd.s32 %v4434_v27, %v4441_v38  ;;  %v801_v24 = vsel %vm3495_vm5, 0, %v3494_v3  ;;  %v5605_v36 = vand.u32 2147483647, %v4283_v26 }
 0x14c   :  { %v802_v4 = vsub.s32 32, %v801_v24  ;;  %v806_v54 = vsub.s32 4294967266, %v801_v24  ;;  %v817_v34 = vsel %vm732_vm12, %v816_v31, %v4485_v52  ;;  %vm949_vm7 = vcmp.gt.s32.totalorder %v948_v39, 0 }
 0x14d   :  { %v4537_v57 = vpop.eup %3693  ;;  %v889_v47 = vmul.u32 %v882_v6, %v873_v21  ;;  %vm891_vm8 = vc.u32 %v4523_v58, %v4525_v33  ;;  %v892_v63 = vadd.s32 1, %v4526_v16  ;;  %v950_v11 = vsel %vm949_vm7, %v948_v39, 0 }
 0x14e   :  { %5697 = vst [vmem:[#allocation16_spill] sm:$0xff] %v4537_v57  ;;  %v4542_v27 = vpop.eup %3695  ;;  %v5603_v38 = vxor.u32 2147483648, %v4537_v57  ;;  %v803_v15 = vshll.u32 %v4502_v17, %v801_v24  ;;  %v804_v41 = vshrl.u32 %v786_v49, %v802_v4  ;;  %v807_v5 = vadd.s32 127, %v806_v54  ;;  %v4570_v4 = vpop.permute.xlu1 %77  ;;  %v36_v54 = vld [vmem:[#allocation2 + $0x50] sm:$0xff] }
 0x14f   :  { %5698 = vst [vmem:[#allocation17_spill] sm:$0xff] %v4542_v27  ;;  %v5604_v52 = vxor.u32 2147483648, %v4542_v27  ;;  %v4549_v42 = vsel %vm4517_vm10, 0, %v817_v34  ;;  %v893_v6 = vsel %vm891_vm8, %v892_v63, %v4526_v16  ;;  %v952_v0 = vand.u32 31, %v950_v11 }
 0x150   :  { %5699 = vst [vmem:[#allocation18_spill] sm:$0xff] %v4549_v42  ;;  %v727_v10 = vsel %vm725_vm6, %v5603_v38, %v4542_v27  ;;  %v805_v53 = vor.u32 %v804_v41, %v803_v15  ;;  %v808_v61 = vshll.u32 %v807_v5, 23  ;;  %v894_v17 = vadd.s32 %v893_v6, %v889_v47 }
 0x151   :  { %vm5622_vm13 = vweird.f32 %v4044_v25  ;;  %vm721_vm9 = vcmp.lt.s32.totalorder %v4509_v48, 2  ;;  %v724_v62 = vsel %vm722_vm3, %v4537_v57, %v5604_v52  ;;  %v953_v3 = vsub.s32 32, %v952_v0 }
 0x152   :  { %v728_v31 = vsel %vm721_vm9, %v724_v62, %v727_v10  ;;  %v809_v43 = vor.u32 4788187, %v808_v61  ;;  %v823_v14 = vadd.s32 3, %v4549_v42  ;;  %v895_v51 = vadd.s32 536870912, %v894_v17 }
 0x153   :  { %v729_v16 = vsel %vm5622_vm13, nan, %v728_v31  ;;  %v812_v21 = vcvt.s32.f32 %v805_v53  ;;  %v945_v39 = vand.u32 8388607, %v5605_v36  ;;  %v5700_v49 = vmov 2475754826  }
 0x154   :  { %v956_v24 = vshrl.u32 %v5700_v49, %v953_v3  ;;  %v810_v48 = vand.u32 2147483647, %v809_v43  ;;  %v896_v34 = vshrl.u32 %v895_v51, 30  ;;  %v5701_v47 = vmov 2131351028   ;;  %1775 = vst [vmem:[#allocation5 + $0x28] sm:$0xff] %v729_v16 }
 0x155   :  { %v959_v63 = vshrl.u32 %v5701_v47, %v953_v3  ;;  %v5702_v15 = vmov 2102212464   ;;  %v951_v5 = vshrl.u32 %v950_v11, 5  ;;  %v955_v6 = vshll.u32 %v5606_v45, %v952_v0 }
 0x156   :  { %v962_v41 = vshrl.u32 %v5702_v15, %v953_v3  ;;  %v964_v10 = vshll.u32 %v5702_v15, %v952_v0  ;;  %v965_v53 = vshrl.u32 %v5609_v55, %v953_v3  ;;  %v813_v61 = vmul.f32 %v812_v21, %v810_v48 }
 0x157   :  { %v897_v62 = vshll.u32 %v896_v34, 30  ;;  %v958_v31 = vshll.u32 %v5700_v49, %v952_v0  ;;  %v961_v38 = vshll.u32 %v5701_v47, %v952_v0  ;;  %v4580_v43 = vmul.f32 %v4570_v4, %v36_v54 }
 0x158   :  { %v957_v51 = vor.u32 %v956_v24, %v955_v6  ;;  %v966_v52 = vor.u32 %v965_v53, %v964_v10  ;;  %v5704_v36 = vmov 1326507024   ;;  %v814_v11 = vxor.u32 2147483648, %v813_v61 }
 0x159   :  { %5703 = vst [vmem:[#allocation19_spill] sm:$0xff] %v4580_v43  ;;  %v968_v16 = vshrl.u32 %v5704_v36, %v953_v3  ;;  %vm836_vm0 = vcmp.lt.s32.totalorder %v4280_v28, 0  ;;  %v4584_v45 = vsub.s32 %v894_v17, %v897_v62  ;;  %v960_v25 = vor.u32 %v959_v63, %v958_v31 }
 0x15a   :  { %v963_v55 = vor.u32 %v962_v41, %v961_v38  ;;  %v4586_v21 = vand.u32 3, %v823_v14  ;;  %v946_v48 = vor.u32 8388608, %v945_v39  ;;  %v5705_v57 = vmov 920167782  }
 0x15b   :  { %v967_v27 = vshll.u32 %v5705_v57, %v952_v0  ;;  %v1045_v23 = vand.u32 2139095040, %v4500_v40  ;;  %v815_v24 = vsel %vm732_vm12, %v814_v11, %v813_v61  ;;  %v900_v54 = vsub.s32 0, %v4584_v45 }
 0x15c   :  { %vm970_vm2 = vcmp.lt.s32.totalorder %v951_v5, 1  ;;  %vm973_vm3 = vcmp.lt.s32.totalorder %v951_v5, 4  ;;  %v818_v17 = vsel %vm4517_vm10, %v4278_v7, %v815_v24  ;;  %vm972_vm5 = vcmp.lt.s32.totalorder %v951_v5, 3 }
 0x15d   :  { %v969_v63 = vor.u32 %v968_v16, %v967_v27  ;;  %v979_v38 = vsel %vm973_vm3, %v966_v52, 920167782  ;;  %3697 = vcosq.f32 %v818_v17  ;;  %v3497_v0 = vmin.u32 %v900_v54, %v4584_v45 }
 0x15e   :  { %v975_v14 = vsel %vm973_vm3, %v963_v55, 2102212464  ;;  %v978_v39 = vsel %vm970_vm2, %v957_v51, %v960_v25  ;;  %3699 = vsinq.f32 %v818_v17  ;;  %v920_v41 = vsub.s32 4, %v896_v34 }
 0x15f   :  { %v5706_v6 = vmov 683565275   ;;  %v980_v53 = vsel %vm972_vm5, %v963_v55, %v979_v38  ;;  %v902_v61 = vclz %v3497_v0  ;;  %vm971_vm12 = vcmp.lt.s32.totalorder %v951_v5, 2 }
 0x160   :  { %v954_v10 = vshrl.u32 %v5706_v6, %v953_v3  ;;  %v982_v59 = vsel %vm970_vm2, %v960_v25, %v963_v55  ;;  %v986_v27 = vshll.u32 %v946_v48, 8  ;;  %v976_v31 = vsel %vm972_vm5, %v960_v25, %v975_v14 }
 0x161   :  { %v981_v16 = vsel %vm971_vm12, %v978_v39, %v980_v53  ;;  %v983_v11 = vsel %vm973_vm3, %v969_v63, 1326507024  ;;  %v3498_v24 = vadd.s32 4294967294, %v902_v61  ;;  %v5707_v38 = vand.u32 2147483647, %v4280_v28 }
 0x162   :  { %v974_v62 = vsel %vm970_vm2, %v954_v10, %v957_v51  ;;  %v984_v54 = vsel %vm972_vm5, %v966_v52, %v983_v11  ;;  %v4608_v17 = vmul.u32.u64.low %v986_v27, %v981_v16  ;;  %v4609_v3 = vmul.u32.u64.high %v986_v27, %v981_v16, %v4608_v17 }
 0x163   :  { %vm4614_vm10 = vcmp.le.f32.partialorder %v5707_v38, 0.7853982  ;;  %v921_v25 = vsel %vm836_vm0, %v920_v41, %v896_v34  ;;  %v985_v51 = vsel %vm971_vm12, %v982_v59, %v984_v54  ;;  %v1046_v48 = vshrl.u32 %v1045_v23, 23 }
 0x164   :  { %vm825_vm6 = vcmp.lt.s32.totalorder %v4586_v21, 2  ;;  %vm3499_vm7 = vcmp.lt.s32.totalorder %v3498_v24, 0  ;;  %v977_v52 = vsel %vm971_vm12, %v974_v62, %v976_v31  ;;  %vm826_vm8 = vcmp.eq.s32.totalorder %v4586_v21, 0 }
 0x165   :  { %v4623_v63 = vmul.u32.u64.low %v986_v27, %v985_v51  ;;  %v4624_v0 = vmul.u32.u64.high %v986_v27, %v985_v51, %v4623_v63  ;;  %v905_v14 = vsel %vm3499_vm7, 0, %v3498_v24  ;;  %v5618_v39 = vand.u32 2147483647, %v4500_v40 }
 0x166   :  { %v3504_v10 = vadd.s32 4294967169, %v1046_v48  ;;  %v890_v34 = vadd.s32 %v4525_v33, %v4523_v58  ;;  %v906_v41 = vsub.s32 32, %v905_v14  ;;  %v910_v53 = vsub.s32 4294967266, %v905_v14 }
 0x167   :  { %v996_v23 = vadd.s32 1, %v4609_v3  ;;  %v907_v61 = vshll.u32 %v4584_v45, %v905_v14  ;;  %v4634_v5 = vsel %vm4614_vm10, 0, %v921_v25  ;;  %v993_v59 = vmul.u32 %v986_v27, %v977_v52  ;;  %v4636_v31 = vpop.eup %3697  ;;  %v37_v27 = vld [vmem:[#allocation2 + $0x58] sm:$0xff] }
 0x168   :  { %5710 = vst [vmem:[#allocation20_spill] sm:$0xff] %v4634_v5  ;;  %v1052_v62 = vadd.s32 1, %v3504_v10  ;;  %5711 = vst [vmem:[#allocation21_spill] sm:$0xff] %v4636_v31  ;;  %v908_v16 = vshrl.u32 %v890_v34, %v906_v41  ;;  %v911_v11 = vadd.s32 127, %v910_v53  ;;  %vm995_vm9 = vc.u32 %v4624_v0, %v4608_v17  ;;  %v4641_v33 = vpop.eup %3699 }
 0x169   :  { %v1149_v58 = vand.u32 2139095040, %v4580_v43  ;;  %5712 = vst [vmem:[#allocation22_spill] sm:$0xff] %v4641_v33  ;;  %vm829_vm2 = vcmp.eq.s32.totalorder %v4586_v21, 2  ;;  %v5616_v45 = vxor.u32 2147483648, %v4636_v31  ;;  %v997_v24 = vsel %vm995_vm9, %v996_v23, %v4609_v3 }
 0x16a   :  { %vm1053_vm3 = vcmp.gt.s32.totalorder %v1052_v62, 0  ;;  %v5617_v54 = vxor.u32 2147483648, %v4641_v33  ;;  %v909_v38 = vor.u32 %v908_v16, %v907_v61  ;;  %v912_v25 = vshll.u32 %v911_v11, 23 }
 0x16b   :  { %v998_v51 = vadd.s32 %v997_v24, %v993_v59  ;;  %v831_v48 = vsel %vm829_vm2, %v5616_v45, %v4641_v33  ;;  %v927_v52 = vadd.s32 3, %v4634_v5  ;;  %v1049_v63 = vand.u32 8388607, %v5618_v39 }
 0x16c   :  { %v1054_v14 = vsel %vm1053_vm3, %v1052_v62, 0  ;;  %v828_v3 = vsel %vm826_vm8, %v4636_v31, %v5617_v54  ;;  %v913_v10 = vor.u32 4788187, %v912_v25  ;;  %v1150_v41 = vshrl.u32 %v1149_v58, 23 }
 0x16d   :  { %v999_v34 = vadd.s32 536870912, %v998_v51  ;;  %v4659_v53 = vmul.f32 %v4570_v4, %v37_v27  ;;  %vm5621_vm5 = vweird.f32 %v4278_v7  ;;  %v832_v23 = vsel %vm825_vm6, %v828_v3, %v831_v48 }
 0x16e   :  { %v1056_v61 = vand.u32 31, %v1054_v14  ;;  %v833_v59 = vsel %vm5621_vm5, nan, %v832_v23  ;;  %v914_v62 = vand.u32 2147483647, %v913_v10  ;;  %v916_v16 = vcvt.s32.f32 %v909_v38 }
 0x16f   :  { %5713 = vst [vmem:[#allocation23_spill] sm:$0xff] %v4659_v53  ;;  %v4666_v11 = vshrl.u32 %v999_v34, 30  ;;  %v4668_v24 = vand.u32 3, %v927_v52  ;;  %v1050_v25 = vor.u32 8388608, %v1049_v63  ;;  %1776 = vst [vmem:[#allocation5 + $0x30] sm:$0xff] %v833_v59  ;;  %v3508_v48 = vadd.s32 4294967169, %v1150_v41 }
 0x170   :  { %v1057_v58 = vsub.s32 32, %v1056_v61  ;;  %v917_v27 = vmul.f32 %v916_v16, %v914_v62  ;;  %v1059_v21 = vshll.u32 %v5706_v6, %v1056_v61  ;;  %v1062_v10 = vshll.u32 %v5700_v49, %v1056_v61 }
 0x171   :  { %v1001_v45 = vshll.u32 %v4666_v11, 30  ;;  %v1065_v23 = vshll.u32 %v5701_v47, %v1056_v61  ;;  %v1055_v62 = vshrl.u32 %v1054_v14, 5  ;;  %v1068_v54 = vshll.u32 %v5702_v15, %v1056_v61 }
 0x172   :  { %v1060_v3 = vshrl.u32 %v5700_v49, %v1057_v58  ;;  %v1063_v38 = vshrl.u32 %v5701_v47, %v1057_v58  ;;  %v1066_v52 = vshrl.u32 %v5702_v15, %v1057_v58  ;;  %v918_v34 = vxor.u32 2147483648, %v917_v27 }
 0x173   :  { %v4677_v63 = vsub.s32 %v998_v51, %v1001_v45  ;;  %v1069_v59 = vshrl.u32 %v5705_v57, %v1057_v58  ;;  %v4682_v41 = vshll.u32 %v1050_v25, 8  ;;  %vm940_vm12 = vcmp.lt.s32.totalorder %v4283_v26, 0 }
 0x174   :  { %v1061_v16 = vor.u32 %v1060_v3, %v1059_v21  ;;  %v919_v39 = vsel %vm836_vm0, %v918_v34, %v917_v27  ;;  %v1064_v7 = vor.u32 %v1063_v38, %v1062_v10  ;;  %v1067_v5 = vor.u32 %v1066_v52, %v1065_v23 }
 0x175   :  { %v1004_v4 = vsub.s32 0, %v4677_v63  ;;  %v922_v45 = vsel %vm4614_vm10, %v4280_v28, %v919_v39  ;;  %v1070_v51 = vor.u32 %v1069_v59, %v1068_v54  ;;  %v1071_v14 = vshll.u32 %v5705_v57, %v1056_v61 }
 0x176   :  { %v1072_v21 = vshrl.u32 %v5704_v36, %v1057_v58  ;;  %3701 = vcosq.f32 %v922_v45  ;;  %v5714_v27 = vand.u32 2147483647, %v4580_v43  ;;  %v1156_v10 = vadd.s32 1, %v3508_v48 }
 0x177   :  { %v3501_v25 = vmin.u32 %v1004_v4, %v4677_v63  ;;  %3703 = vsinq.f32 %v922_v45  ;;  %v1024_v38 = vsub.s32 4, %v4666_v11  ;;  %v1058_v55 = vshrl.u32 %v5706_v6, %v1057_v58 }
 0x178   :  { %v4696_v3 = vand.u32 8388607, %v5714_v27  ;;  %v1073_v39 = vor.u32 %v1072_v21, %v1071_v14  ;;  %v5715_v54 = vand.u32 2147483647, %v4283_v26  ;;  %vm1074_vm10 = vcmp.lt.s32.totalorder %v1055_v62, 1 }
 0x179   :  { %v1006_v52 = vclz %v3501_v25  ;;  %vm1075_vm6 = vcmp.lt.s32.totalorder %v1055_v62, 2  ;;  %vm1077_vm7 = vcmp.lt.s32.totalorder %v1055_v62, 4  ;;  %vm1076_vm8 = vcmp.lt.s32.totalorder %v1055_v62, 3 }
 0x17a   :  { %vm4702_vm0 = vcmp.le.f32.partialorder %v5715_v54, 0.7853982  ;;  %v1079_v4 = vsel %vm1077_vm7, %v1067_v5, 2102212464  ;;  %v1082_v34 = vsel %vm1074_vm10, %v1061_v16, %v1064_v7  ;;  %v1083_v48 = vsel %vm1077_vm7, %v1070_v51, 920167782 }
 0x17b   :  { %vm933_vm9 = vcmp.eq.s32.totalorder %v4668_v24, 2  ;;  %v3502_v23 = vadd.s32 4294967294, %v1006_v52  ;;  %v1078_v59 = vsel %vm1074_vm10, %v1058_v55, %v1061_v16  ;;  %v1084_v58 = vsel %vm1076_vm8, %v1067_v5, %v1083_v48 }
 0x17c   :  { %v1086_v45 = vsel %vm1074_vm10, %v1064_v7, %v1067_v5  ;;  %vm930_vm2 = vcmp.eq.s32.totalorder %v4668_v24, 0  ;;  %v1080_v14 = vsel %vm1076_vm8, %v1064_v7, %v1079_v4  ;;  %v1085_v21 = vsel %vm1075_vm6, %v1082_v34, %v1084_v58 }
 0x17d   :  { %v1087_v25 = vsel %vm1077_vm7, %v1073_v39, 1326507024  ;;  %vm1157_vm3 = vcmp.gt.s32.totalorder %v1156_v10, 0  ;;  %vm929_vm5 = vcmp.lt.s32.totalorder %v4668_v24, 2  ;;  %vm3503_vm13 = vcmp.lt.s32.totalorder %v3502_v23, 0 }
 0x17e   :  { %v1088_v27 = vsel %vm1076_vm8, %v1070_v51, %v1087_v25  ;;  %v4714_v54 = vmul.u32.u64.low %v4682_v41, %v1085_v21  ;;  %v4715_v52 = vmul.u32.u64.high %v4682_v41, %v1085_v21, %v4714_v54  ;;  %vm926_vm10 = vweird.f32 %v4280_v28 }
 0x17f   :  { %v994_v5 = vadd.s32 %v4608_v17, %v4624_v0  ;;  %v1009_v7 = vsel %vm3503_vm13, 0, %v3502_v23  ;;  %v1089_v16 = vsel %vm1075_vm6, %v1086_v45, %v1088_v27  ;;  %v1158_v55 = vsel %vm1157_vm3, %v1156_v10, 0 }
 0x180   :  { %v1010_v39 = vsub.s32 32, %v1009_v7  ;;  %v1014_v4 = vsub.s32 4294967266, %v1009_v7  ;;  %v1025_v51 = vsel %vm940_vm12, %v1024_v38, %v4666_v11  ;;  %v1081_v34 = vsel %vm1075_vm6, %v1078_v59, %v1080_v14  ;;  %v4731_v17 = vpop.eup %3701 }
 0x181   :  { %v4727_v48 = vmul.u32.u64.low %v4682_v41, %v1089_v16  ;;  %v4728_v58 = vmul.u32.u64.high %v4682_v41, %v1089_v16, %v4727_v48  ;;  %v1154_v21 = vor.u32 8388608, %v4696_v3  ;;  %v1160_v25 = vand.u32 31, %v1158_v55  ;;  %5718 = vst [vmem:[#allocation24_spill] sm:$0xff] %v4731_v17  ;;  %v4735_v27 = vpop.eup %3703 }
 0x182   :  { %v1011_v0 = vshll.u32 %v4677_v63, %v1009_v7  ;;  %v1012_v10 = vshrl.u32 %v994_v5, %v1010_v39  ;;  %v1015_v23 = vadd.s32 127, %v1014_v4  ;;  %v1100_v45 = vadd.s32 1, %v4715_v52  ;;  %5719 = vst [vmem:[#allocation25_spill] sm:$0xff] %v4735_v27 }
 0x183   :  { %v5623_v11 = vxor.u32 2147483648, %v4731_v17  ;;  %v4740_v62 = vsel %vm4702_vm0, 0, %v1025_v51  ;;  %v1097_v38 = vmul.u32 %v4682_v41, %v1081_v34  ;;  %v1161_v3 = vsub.s32 32, %v1160_v25 }
 0x184   :  { %5720 = vst [vmem:[#allocation26_spill] sm:$0xff] %v4740_v62  ;;  %v5626_v59 = vxor.u32 2147483648, %v4735_v27  ;;  %v1013_v14 = vor.u32 %v1012_v10, %v1011_v0  ;;  %v1016_v16 = vshll.u32 %v1015_v23, 23  ;;  %v4744_v63 = vshrl.u32 %v1158_v55, 5 }
 0x185   :  { %v935_v5 = vsel %vm933_vm9, %v5623_v11, %v4735_v27  ;;  %vm1099_vm13 = vc.u32 %v4728_v58, %v4714_v54  ;;  %v1163_v7 = vshll.u32 %v5706_v6, %v1160_v25  ;;  %v1166_v41 = vshll.u32 %v5700_v49, %v1160_v25 }
 0x186   :  { %v932_v55 = vsel %vm930_vm2, %v4731_v17, %v5626_v59  ;;  %v1017_v39 = vor.u32 4788187, %v1016_v16  ;;  %v1101_v4 = vsel %vm1099_vm13, %v1100_v45, %v4715_v52  ;;  %v1169_v51 = vshll.u32 %v5701_v47, %v1160_v25 }
 0x187   :  { %v936_v34 = vsel %vm929_vm5, %v932_v55, %v935_v5  ;;  %v1102_v48 = vadd.s32 %v1101_v4, %v1097_v38  ;;  %v1164_v0 = vshrl.u32 %v5700_v49, %v1161_v3  ;;  %v1167_v10 = vshrl.u32 %v5701_v47, %v1161_v3 }
 0x188   :  { %v937_v23 = vsel %vm926_vm10, nan, %v936_v34  ;;  %v1018_v11 = vand.u32 2147483647, %v1017_v39  ;;  %v1020_v27 = vcvt.s32.f32 %v1013_v14  ;;  %v1170_v59 = vshrl.u32 %v5702_v15, %v1161_v3 }
 0x189   :  { %v1103_v16 = vadd.s32 536870912, %v1102_v48  ;;  %v1165_v17 = vor.u32 %v1164_v0, %v1163_v7  ;;  %v1172_v52 = vshll.u32 %v5702_v15, %v1160_v25  ;;  %v1173_v45 = vshrl.u32 %v5705_v57, %v1161_v3  ;;  %1777 = vst [vmem:[#allocation5 + $0x38] sm:$0xff] %v937_v23 }
 0x18a   :  { %v1021_v24 = vmul.f32 %v1020_v27, %v1018_v11  ;;  %vm1044_vm5 = vcmp.lt.s32.totalorder %v4500_v40, 0  ;;  %v1168_v38 = vor.u32 %v1167_v10, %v1166_v41  ;;  %v1175_v5 = vshll.u32 %v5705_v57, %v1160_v25 }
 0x18b   :  { %v1176_v55 = vshrl.u32 %v5704_v36, %v1161_v3  ;;  %v1031_v39 = vadd.s32 3, %v4740_v62  ;;  %v1104_v14 = vshrl.u32 %v1103_v16, 30  ;;  %v1171_v4 = vor.u32 %v1170_v59, %v1169_v51  ;;  %v83_v16 = vpop.permute.xlu0 %82 }
 0x18c   :  { %v1174_v34 = vor.u32 %v1173_v45, %v1172_v52  ;;  %v1022_v28 = vxor.u32 2147483648, %v1021_v24  ;;  %vm1178_vm6 = vcmp.lt.s32.totalorder %v4744_v63, 1  ;;  %v1194_v0 = vshll.u32 %v1154_v21, 8  ;;  %v38_v52 = vld [vmem:[#allocation2 + $0x60] sm:$0xff] }
 0x18d   :  { %v1177_v7 = vor.u32 %v1176_v55, %v1175_v5  ;;  %v1105_v31 = vshll.u32 %v1104_v14, 30  ;;  %v1162_v27 = vshrl.u32 %v5706_v6, %v1161_v3  ;;  %vm1179_vm7 = vcmp.lt.s32.totalorder %v4744_v63, 2 }
 0x18e   :  { %vm1181_vm8 = vcmp.lt.s32.totalorder %v4744_v63, 4  ;;  %v1023_v25 = vsel %vm940_vm12, %v1022_v28, %v1021_v24  ;;  %vm1180_vm9 = vcmp.lt.s32.totalorder %v4744_v63, 3  ;;  %v1186_v11 = vsel %vm1178_vm6, %v1165_v17, %v1168_v38 }
 0x18f   :  { %v1187_v59 = vsel %vm1181_vm8, %v1174_v34, 920167782  ;;  %v1026_v21 = vsel %vm4702_vm0, %v4283_v26, %v1023_v25  ;;  %v4787_v41 = vsub.s32 %v1102_v48, %v1105_v31  ;;  %v1128_v3 = vsub.s32 4, %v1104_v14  ;;  %v39_v48 = vld [vmem:[#allocation2 + $0x68] sm:$0xff] }
 0x190   :  { %v1183_v51 = vsel %vm1181_vm8, %v1171_v4, 2102212464  ;;  %3705 = vcosq.f32 %v1026_v21  ;;  %v1188_v10 = vsel %vm1180_vm9, %v1171_v4, %v1187_v59  ;;  %v1190_v28 = vsel %vm1178_vm6, %v1168_v38, %v1171_v4 }
 0x191   :  { %v1191_v23 = vsel %vm1181_vm8, %v1177_v7, 1326507024  ;;  %3707 = vsinq.f32 %v1026_v21  ;;  %v1108_v45 = vsub.s32 0, %v4787_v41  ;;  %v1182_v61 = vsel %vm1178_vm6, %v1162_v27, %v1165_v17 }
 0x192   :  { %v1189_v31 = vsel %vm1179_vm7, %v1186_v11, %v1188_v10  ;;  %v1184_v24 = vsel %vm1180_vm9, %v1168_v38, %v1183_v51  ;;  %v1192_v5 = vsel %vm1180_vm9, %v1174_v34, %v1191_v23  ;;  %v1032_v7 = vand.u32 3, %v1031_v39 }
 0x193   :  { %v4802_v55 = vmul.u32.u64.low %v1194_v0, %v1189_v31  ;;  %v4803_v4 = vmul.u32.u64.high %v1194_v0, %v1189_v31, %v4802_v55  ;;  %v3505_v25 = vmin.u32 %v1108_v45, %v4787_v41  ;;  %v1129_v17 = vsel %vm1044_vm5, %v1128_v3, %v1104_v14 }
 0x194   :  { %v1193_v27 = vsel %vm1179_vm7, %v1190_v28, %v1192_v5  ;;  %v4811_v11 = vmul.f32 %v83_v16, %v38_v52  ;;  %v4816_v21 = vmul.f32 %v83_v16, %v39_v48  ;;  %v5721_v34 = vand.u32 2147483647, %v4500_v40 }
 0x195   :  { %v4813_v59 = vmul.u32.u64.low %v1194_v0, %v1193_v27  ;;  %v4814_v38 = vmul.u32.u64.high %v1194_v0, %v1193_v27, %v4813_v59  ;;  %v1110_v39 = vclz %v3505_v25  ;;  %v1185_v14 = vsel %vm1179_vm7, %v1182_v61, %v1184_v24 }
 0x196   :  { %vm4820_vm12 = vcmp.le.f32.partialorder %v5721_v34, 0.7853982  ;;  %v1204_v10 = vadd.s32 1, %v4803_v4  ;;  %v5632_v28 = vand.u32 2147483647, %v4659_v53  ;;  %v1253_v23 = vand.u32 2139095040, %v4659_v53 }
 0x197   :  { %v4828_v3 = vsel %vm4820_vm12, 0, %v1129_v17  ;;  %vm5674_vm0 = vweird.f32 %v4283_v26  ;;  %vm1033_vm2 = vcmp.lt.s32.totalorder %v1032_v7, 2  ;;  %vm1034_vm3 = vcmp.eq.s32.totalorder %v1032_v7, 0 }
 0x198   :  { %5724 = vst [vmem:[#allocation27_spill] sm:$0xff] %v4828_v3  ;;  %v3506_v16 = vadd.s32 4294967294, %v1110_v39  ;;  %vm1037_vm13 = vcmp.eq.s32.totalorder %v1032_v7, 2  ;;  %v1201_v52 = vmul.u32 %v1194_v0, %v1185_v14  ;;  %vm1203_vm6 = vc.u32 %v4814_v38, %v4802_v55 }
 0x199   :  { %v1254_v63 = vshrl.u32 %v1253_v23, 23  ;;  %v1098_v45 = vadd.s32 %v4714_v54, %v4728_v58  ;;  %v1135_v61 = vadd.s32 3, %v4828_v3  ;;  %v1205_v31 = vsel %vm1203_vm6, %v1204_v10, %v4803_v4 }
 0x19a   :  { %vm3507_vm7 = vcmp.lt.s32.totalorder %v3506_v16, 0  ;;  %v4840_v48 = vpop.eup %3705  ;;  %v1206_v5 = vadd.s32 %v1205_v31, %v1201_v52  ;;  %v1257_v0 = vand.u32 8388607, %v5632_v28  ;;  %v1357_v14 = vand.u32 2139095040, %v4811_v11  ;;  %v40_v31 = vld [vmem:[#allocation2 + $0x70] sm:$0xff] }
 0x19b   :  { %5725 = vst [vmem:[#allocation28_spill] sm:$0xff] %v4840_v48  ;;  %v1113_v24 = vsel %vm3507_vm7, 0, %v3506_v16  ;;  %v3512_v25 = vadd.s32 4294967169, %v1254_v63  ;;  %v4844_v17 = vpop.eup %3707  ;;  %v5637_v27 = vxor.u32 2147483648, %v4840_v48  ;;  %v4855_v63 = vpop.permute.xlu1 %87  ;;  %vm1148_vm9 = vcmp.lt.s32.totalorder %v4580_v43, 0 }
 0x19c   :  { %5726 = vst [vmem:[#allocation29_spill] sm:$0xff] %v4844_v17  ;;  %v1114_v59 = vsub.s32 32, %v1113_v24  ;;  %v1118_v34 = vsub.s32 4294967266, %v1113_v24  ;;  %v5640_v58 = vxor.u32 2147483648, %v4844_v17  ;;  %v1207_v39 = vadd.s32 536870912, %v1206_v5 }
 0x19d   :  { %v1260_v4 = vadd.s32 1, %v3512_v25  ;;  %v1039_v10 = vsel %vm1037_vm13, %v5637_v27, %v4844_v17  ;;  %v1115_v23 = vshll.u32 %v4787_v41, %v1113_v24  ;;  %v1258_v54 = vor.u32 8388608, %v1257_v0 }
 0x19e   :  { %v1116_v16 = vshrl.u32 %v1098_v45, %v1114_v59  ;;  %v1119_v52 = vadd.s32 127, %v1118_v34  ;;  %v1036_v28 = vsel %vm1034_vm3, %v4840_v48, %v5640_v58  ;;  %v1208_v25 = vshrl.u32 %v1207_v39, 30 }
 0x19f   :  { %vm1261_vm8 = vcmp.gt.s32.totalorder %v1260_v4, 0  ;;  %v1040_v3 = vsel %vm1033_vm2, %v1036_v28, %v1039_v10  ;;  %v1358_v59 = vshrl.u32 %v1357_v14, 23  ;;  %v4865_v34 = vmul.f32 %v4855_v63, %v40_v31 }
 0x1a0   :  { %v1117_v62 = vor.u32 %v1116_v16, %v1115_v23  ;;  %v1120_v33 = vshll.u32 %v1119_v52, 23  ;;  %v1262_v27 = vsel %vm1261_vm8, %v1260_v4, 0  ;;  %v1041_v41 = vsel %vm5674_vm0, nan, %v1040_v3 }
 0x1a1   :  { %v1209_v45 = vshll.u32 %v1208_v25, 30  ;;  %v1232_v24 = vsub.s32 4, %v1208_v25  ;;  %v1264_v39 = vand.u32 31, %v1262_v27  ;;  %1778 = vst [vmem:[#allocation5 + $0x40] sm:$0xff] %v1041_v41  ;;  %v4868_v0 = vand.u32 3, %v1135_v61 }
 0x1a2   :  { %v1121_v17 = vor.u32 4788187, %v1120_v33  ;;  %v1202_v7 = vadd.s32 %v4802_v55, %v4814_v38  ;;  %v4872_v4 = vshll.u32 %v1258_v54, 8  ;;  %v1124_v10 = vcvt.s32.f32 %v1117_v62 }
 0x1a3   :  { %v1210_v28 = vsub.s32 %v1206_v5, %v1209_v45  ;;  %v1265_v23 = vsub.s32 32, %v1264_v39  ;;  %v5727_v14 = vand.u32 2147483647, %v4811_v11  ;;  %v4880_v52 = vsel %vm1148_vm9, %v1232_v24, %v1208_v25 }
 0x1a4   :  { %v1122_v3 = vand.u32 2147483647, %v1121_v17  ;;  %v1263_v61 = vshrl.u32 %v1262_v27, 5  ;;  %v3516_v31 = vadd.s32 4294967169, %v1358_v59  ;;  %v1267_v55 = vshll.u32 %v5706_v6, %v1264_v39 }
 0x1a5   :  { %v4876_v16 = vand.u32 8388607, %v5727_v14  ;;  %v1212_v33 = vsub.s32 0, %v1210_v28  ;;  %v1268_v38 = vshrl.u32 %v5700_v49, %v1265_v23  ;;  %v1271_v5 = vshrl.u32 %v5701_v47, %v1265_v23 }
 0x1a6   :  { %v1125_v41 = vmul.f32 %v1124_v10, %v1122_v3  ;;  %v1270_v17 = vshll.u32 %v5700_v49, %v1264_v39  ;;  %v1273_v54 = vshll.u32 %v5701_v47, %v1264_v39  ;;  %v1274_v45 = vshrl.u32 %v5702_v15, %v1265_v23 }
 0x1a7   :  { %v3509_v62 = vmin.u32 %v1212_v33, %v1210_v28  ;;  %v1269_v58 = vor.u32 %v1268_v38, %v1267_v55  ;;  %v1276_v25 = vshll.u32 %v5702_v15, %v1264_v39  ;;  %v1277_v27 = vshrl.u32 %v5705_v57, %v1265_v23 }
 0x1a8   :  { %v1126_v14 = vxor.u32 2147483648, %v1125_v41  ;;  %v1266_v59 = vshrl.u32 %v5706_v6, %v1265_v23  ;;  %vm1282_vm2 = vcmp.lt.s32.totalorder %v1263_v61, 1  ;;  %vm1283_vm3 = vcmp.lt.s32.totalorder %v1263_v61, 2 }
 0x1a9   :  { %v1214_v24 = vclz %v3509_v62  ;;  %v1272_v10 = vor.u32 %v1271_v5, %v1270_v17  ;;  %v1275_v33 = vor.u32 %v1274_v45, %v1273_v54  ;;  %v1278_v26 = vor.u32 %v1277_v27, %v1276_v25 }
 0x1aa   :  { %v1127_v3 = vsel %vm1044_vm5, %v1126_v14, %v1125_v41  ;;  %v1279_v38 = vshll.u32 %v5705_v57, %v1264_v39  ;;  %v1280_v42 = vshrl.u32 %v5704_v36, %v1265_v23  ;;  %vm1284_vm13 = vcmp.lt.s32.totalorder %v1263_v61, 3 }
 0x1ab   :  { %v1130_v48 = vsel %vm4820_vm12, %v4500_v40, %v1127_v3  ;;  %v3510_v55 = vadd.s32 4294967294, %v1214_v24  ;;  %vm1285_vm6 = vcmp.lt.s32.totalorder %v1263_v61, 4  ;;  %v1286_v62 = vsel %vm1282_vm2, %v1266_v59, %v1269_v58 }
 0x1ac   :  { %3709 = vcosq.f32 %v1130_v48  ;;  %v1281_v41 = vor.u32 %v1280_v42, %v1279_v38  ;;  %v1287_v5 = vsel %vm1285_vm6, %v1275_v33, 2102212464  ;;  %v1290_v51 = vsel %vm1282_vm2, %v1269_v58, %v1272_v10 }
 0x1ad   :  { %3711 = vsinq.f32 %v1130_v48  ;;  %vm3511_vm7 = vcmp.lt.s32.totalorder %v3510_v55, 0  ;;  %v1288_v54 = vsel %vm1284_vm13, %v1272_v10, %v1287_v5  ;;  %v1291_v45 = vsel %vm1285_vm6, %v1278_v26, 920167782 }
 0x1ae   :  { %v1217_v17 = vsel %vm3511_vm7, 0, %v3510_v55  ;;  %v1294_v25 = vsel %vm1282_vm2, %v1272_v10, %v1275_v33  ;;  %v1289_v27 = vsel %vm1283_vm3, %v1286_v62, %v1288_v54  ;;  %v1292_v48 = vsel %vm1284_vm13, %v1275_v33, %v1291_v45 }
 0x1af   :  { %v1218_v39 = vsub.s32 32, %v1217_v17  ;;  %v1219_v14 = vshll.u32 %v1210_v28, %v1217_v17  ;;  %v1222_v23 = vsub.s32 4294967266, %v1217_v17  ;;  %v1295_v42 = vsel %vm1285_vm6, %v1281_v41, 1326507024 }
 0x1b0   :  { %v1364_v24 = vadd.s32 1, %v3516_v31  ;;  %v1293_v55 = vsel %vm1283_vm3, %v1290_v51, %v1292_v48  ;;  %v1296_v58 = vsel %vm1284_vm13, %v1278_v26, %v1295_v42  ;;  %vm5648_vm12 = vweird.f32 %v4500_v40 }
 0x1b1   :  { %v1220_v59 = vshrl.u32 %v1202_v7, %v1218_v39  ;;  %v1223_v3 = vadd.s32 127, %v1222_v23  ;;  %v1297_v38 = vsel %vm1283_vm3, %v1294_v25, %v1296_v58  ;;  %vm1137_vm8 = vcmp.lt.s32.totalorder %v4868_v0, 2 }
 0x1b2   :  { %v4911_v28 = vmul.u32.u64.low %v4872_v4, %v1293_v55  ;;  %v4912_v5 = vmul.u32.u64.high %v4872_v4, %v1293_v55, %v4911_v28  ;;  %vm1365_vm5 = vcmp.gt.s32.totalorder %v1364_v24, 0  ;;  %v5728_v26 = vand.u32 2147483647, %v4580_v43 }
 0x1b3   :  { %v1221_v10 = vor.u32 %v1220_v59, %v1219_v14  ;;  %v1224_v62 = vshll.u32 %v1223_v3, 23  ;;  %v4916_v33 = vmul.u32.u64.low %v4872_v4, %v1297_v38  ;;  %v4917_v41 = vmul.u32.u64.high %v4872_v4, %v1297_v38, %v4916_v33 }
 0x1b4   :  { %vm4923_vm2 = vcmp.le.f32.partialorder %v5728_v26, 0.7853982  ;;  %v1366_v61 = vsel %vm1365_vm5, %v1364_v24, 0  ;;  %vm1138_vm3 = vcmp.eq.s32.totalorder %v4868_v0, 0  ;;  %vm1141_vm13 = vcmp.eq.s32.totalorder %v4868_v0, 2 }
 0x1b5   :  { %v1225_v31 = vor.u32 4788187, %v1224_v62  ;;  %v4931_v17 = vsel %vm4923_vm2, 0, %v4880_v52  ;;  %v1368_v54 = vand.u32 31, %v1366_v61  ;;  %v1305_v45 = vmul.u32 %v4872_v4, %v1289_v27 }
 0x1b6   :  { %5731 = vst [vmem:[#allocation30_spill] sm:$0xff] %v4931_v17  ;;  %v4933_v51 = vpop.eup %3709  ;;  %v1308_v39 = vadd.s32 1, %v4912_v5  ;;  %v1362_v14 = vor.u32 8388608, %v4876_v16  ;;  %v1228_v42 = vcvt.s32.f32 %v1221_v10  ;;  %vm1307_vm6 = vc.u32 %v4917_v41, %v4911_v28 }
 0x1b7   :  { %5732 = vst [vmem:[#allocation31_spill] sm:$0xff] %v4933_v51  ;;  %v4939_v23 = vpop.eup %3711  ;;  %v5645_v25 = vxor.u32 2147483648, %v4933_v51  ;;  %v1226_v48 = vand.u32 2147483647, %v1225_v31  ;;  %v1239_v24 = vadd.s32 3, %v4931_v17  ;;  %v1369_v4 = vsub.s32 32, %v1368_v54 }
 0x1b8   :  { %5733 = vst [vmem:[#allocation32_spill] sm:$0xff] %v4939_v23  ;;  %v5646_v52 = vxor.u32 2147483648, %v4939_v23  ;;  %v1309_v59 = vsel %vm1307_vm6, %v1308_v39, %v4912_v5  ;;  %v4950_v55 = vshrl.u32 %v1366_v61, 5  ;;  %v1371_v38 = vshll.u32 %v5706_v6, %v1368_v54 }
 0x1b9   :  { %v1143_v16 = vsel %vm1141_vm13, %v5645_v25, %v4939_v23  ;;  %v1229_v27 = vmul.f32 %v1228_v42, %v1226_v48  ;;  %v1310_v3 = vadd.s32 %v1309_v59, %v1305_v45  ;;  %v1372_v10 = vshrl.u32 %v5700_v49, %v1369_v4 }
 0x1ba   :  { %v1140_v58 = vsel %vm1138_vm3, %v4933_v51, %v5646_v52  ;;  %v1375_v5 = vshrl.u32 %v5701_v47, %v1369_v4  ;;  %v1374_v61 = vshll.u32 %v5700_v49, %v1368_v54  ;;  %v1377_v39 = vshll.u32 %v5701_v47, %v1368_v54 }
 0x1bb   :  { %v1144_v62 = vsel %vm1137_vm8, %v1140_v58, %v1143_v16  ;;  %v1230_v33 = vxor.u32 2147483648, %v1229_v27  ;;  %v1311_v26 = vadd.s32 536870912, %v1310_v3  ;;  %v1373_v45 = vor.u32 %v1372_v10, %v1371_v38 }
 0x1bc   :  { %v1145_v31 = vsel %vm5648_vm12, nan, %v1144_v62  ;;  %v1378_v48 = vshrl.u32 %v5702_v15, %v1369_v4  ;;  %v1380_v25 = vshll.u32 %v5702_v15, %v1368_v54  ;;  %v1381_v0 = vshrl.u32 %v5705_v57, %v1369_v4 }
 0x1bd   :  { %v1231_v42 = vsel %vm1148_vm9, %v1230_v33, %v1229_v27  ;;  %v1312_v59 = vshrl.u32 %v1311_v26, 30  ;;  %1779 = vst [vmem:[#allocation5 + $0x48] sm:$0xff] %v1145_v31  ;;  %v1376_v58 = vor.u32 %v1375_v5, %v1374_v61  ;;  %v1383_v38 = vshll.u32 %v5705_v57, %v1368_v54 }
 0x1be   :  { %v1234_v16 = vsel %vm4923_vm2, %v4580_v43, %v1231_v42  ;;  %v1384_v10 = vshrl.u32 %v5704_v36, %v1369_v4  ;;  %vm1252_vm7 = vcmp.lt.s32.totalorder %v4659_v53, 0  ;;  %v1382_v27 = vor.u32 %v1381_v0, %v1380_v25 }
 0x1bf   :  { %3713 = vcosq.f32 %v1234_v16  ;;  %v1313_v62 = vshll.u32 %v1312_v59, 30  ;;  %v1240_v33 = vand.u32 3, %v1239_v24  ;;  %v1379_v26 = vor.u32 %v1378_v48, %v1377_v39 }
 0x1c0   :  { %3715 = vsinq.f32 %v1234_v16  ;;  %v1385_v52 = vor.u32 %v1384_v10, %v1383_v38  ;;  %v1336_v31 = vsub.s32 4, %v1312_v59  ;;  %vm1386_vm9 = vcmp.lt.s32.totalorder %v4950_v55, 1 }
 0x1c1   :  { %v4977_v40 = vsub.s32 %v1310_v3, %v1313_v62  ;;  %v1402_v7 = vshll.u32 %v1362_v14, 8  ;;  %v1370_v5 = vshrl.u32 %v5706_v6, %v1369_v4  ;;  %vm1389_vm5 = vcmp.lt.s32.totalorder %v4950_v55, 4 }
 0x1c2   :  { %v1394_v54 = vsel %vm1386_vm9, %v1373_v45, %v1376_v58  ;;  %v1461_v61 = vand.u32 2139095040, %v4816_v21  ;;  %vm1387_vm8 = vcmp.lt.s32.totalorder %v4950_v55, 2  ;;  %vm1388_vm2 = vcmp.lt.s32.totalorder %v4950_v55, 3 }
 0x1c3   :  { %v1316_v25 = vsub.s32 0, %v4977_v40  ;;  %v1395_v24 = vsel %vm1389_vm5, %v1382_v27, 920167782  ;;  %v1391_v3 = vsel %vm1389_vm5, %v1379_v26, 2102212464  ;;  %v1398_v4 = vsel %vm1386_vm9, %v1376_v58, %v1379_v26 }
 0x1c4   :  { %v1396_v14 = vsel %vm1388_vm2, %v1379_v26, %v1395_v24  ;;  %v1399_v39 = vsel %vm1389_vm5, %v1385_v52, 1326507024  ;;  %v1337_v42 = vsel %vm1252_vm7, %v1336_v31, %v1312_v59  ;;  %vm5670_vm3 = vweird.f32 %v4580_v43 }
 0x1c5   :  { %v3513_v48 = vmin.u32 %v1316_v25, %v4977_v40  ;;  %v1397_v0 = vsel %vm1387_vm8, %v1394_v54, %v1396_v14  ;;  %v1400_v16 = vsel %vm1388_vm2, %v1382_v27, %v1399_v39  ;;  %v5734_v38 = vand.u32 2147483647, %v4659_v53 }
 0x1c6   :  { %v1401_v52 = vsel %vm1387_vm8, %v1398_v4, %v1400_v16  ;;  %v5008_v62 = vmul.u32.u64.low %v1402_v7, %v1397_v0  ;;  %v5009_v26 = vmul.u32.u64.high %v1402_v7, %v1397_v0, %v5008_v62  ;;  %v1390_v31 = vsel %vm1386_vm9, %v1370_v5, %v1373_v45 }
 0x1c7   :  { %vm5002_vm13 = vcmp.le.f32.partialorder %v5734_v38, 0.7853982  ;;  %v1318_v59 = vclz %v3513_v48  ;;  %v1392_v27 = vsel %vm1388_vm2, %v1376_v58, %v1391_v3  ;;  %v5651_v54 = vand.u32 2147483647, %v4816_v21 }
 0x1c8   :  { %v5018_v25 = vsel %vm5002_vm13, 0, %v1337_v42  ;;  %v5020_v24 = vmul.u32.u64.low %v1402_v7, %v1401_v52  ;;  %v5021_v14 = vmul.u32.u64.high %v1402_v7, %v1401_v52, %v5020_v24  ;;  %v1462_v4 = vshrl.u32 %v1461_v61, 23 }
 0x1c9   :  { %5737 = vst [vmem:[#allocation33_spill] sm:$0xff] %v5018_v25  ;;  %v5023_v39 = vpop.eup %3713  ;;  %vm1241_vm6 = vcmp.lt.s32.totalorder %v1240_v33, 2  ;;  %vm1242_vm5 = vcmp.eq.s32.totalorder %v1240_v33, 0  ;;  %vm1245_vm12 = vcmp.eq.s32.totalorder %v1240_v33, 2  ;;  %v3514_v48 = vadd.s32 4294967294, %v1318_v59 }
 0x1ca   :  { %5738 = vst [vmem:[#allocation34_spill] sm:$0xff] %v5023_v39  ;;  %v5025_v45 = vpop.eup %3715  ;;  %v5649_v58 = vxor.u32 2147483648, %v5023_v39  ;;  %v1393_v5 = vsel %vm1387_vm8, %v1390_v31, %v1392_v27  ;;  %v1412_v3 = vadd.s32 1, %v5009_v26  ;;  %v3520_v42 = vadd.s32 4294967169, %v1462_v4 }
 0x1cb   :  { %5739 = vst [vmem:[#allocation35_spill] sm:$0xff] %v5025_v45  ;;  %v5657_v0 = vxor.u32 2147483648, %v5025_v45  ;;  %v1306_v61 = vadd.s32 %v4911_v28, %v4917_v41  ;;  %vm3515_vm9 = vcmp.lt.s32.totalorder %v3514_v48, 0  ;;  %v1343_v16 = vadd.s32 3, %v5018_v25 }
 0x1cc   :  { %v1247_v38 = vsel %vm1245_vm12, %v5649_v58, %v5025_v45  ;;  %v1321_v52 = vsel %vm3515_vm9, 0, %v3514_v48  ;;  %vm1411_vm2 = vc.u32 %v5021_v14, %v5008_v62  ;;  %v1465_v55 = vand.u32 8388607, %v5651_v54  ;;  %v41_v58 = vld [vmem:[#allocation2 + $0x78] sm:$0xff] }
 0x1cd   :  { %v1244_v59 = vsel %vm1242_vm5, %v5023_v39, %v5657_v0  ;;  %v1322_v31 = vsub.s32 32, %v1321_v52  ;;  %v1326_v28 = vsub.s32 4294967266, %v1321_v52  ;;  %v1409_v41 = vmul.u32 %v1402_v7, %v1393_v5 }
 0x1ce   :  { %v1248_v27 = vsel %vm1241_vm6, %v1244_v59, %v1247_v38  ;;  %v1323_v24 = vshll.u32 %v4977_v40, %v1321_v52  ;;  %v1413_v4 = vsel %vm1411_vm2, %v1412_v3, %v5009_v26  ;;  %v1468_v48 = vadd.s32 1, %v3520_v42 }
 0x1cf   :  { %v1249_v25 = vsel %vm5670_vm3, nan, %v1248_v27  ;;  %v1324_v54 = vshrl.u32 %v1306_v61, %v1322_v31  ;;  %v1327_v17 = vadd.s32 127, %v1326_v28  ;;  %v1414_v45 = vadd.s32 %v1413_v4, %v1409_v41 }
 0x1d0   :  { %v1466_v51 = vor.u32 8388608, %v1465_v55  ;;  %vm1469_vm12 = vcmp.gt.s32.totalorder %v1468_v48, 0  ;;  %v1565_v0 = vand.u32 2139095040, %v4865_v34  ;;  %1780 = vst [vmem:[#allocation5 + $0x50] sm:$0xff] %v1249_v25  ;;  %v5052_v40 = vmul.f32 %v4855_v63, %v41_v58 }
 0x1d1   :  { %v1325_v7 = vor.u32 %v1324_v54, %v1323_v24  ;;  %v1328_v33 = vshll.u32 %v1327_v17, 23  ;;  %v1415_v5 = vadd.s32 536870912, %v1414_v45  ;;  %v1470_v38 = vsel %vm1469_vm12, %v1468_v48, 0 }
 0x1d2   :  { %vm1356_vm8 = vcmp.lt.s32.totalorder %v4811_v11, 0  ;;  %v1472_v26 = vand.u32 31, %v1470_v38  ;;  %v5658_v3 = vand.u32 2147483647, %v4865_v34  ;;  %v5056_v61 = vand.u32 3, %v1343_v16 }
 0x1d3   :  { %v1329_v42 = vor.u32 4788187, %v1328_v33  ;;  %v5740_v52 = vand.u32 2147483647, %v4811_v11  ;;  %v1416_v17 = vshrl.u32 %v1415_v5, 30  ;;  %v5065_v54 = vadd.s32 %v5008_v62, %v5021_v14 }
 0x1d4   :  { %v1473_v63 = vsub.s32 32, %v1472_v26  ;;  %v5067_v25 = vshll.u32 %v1466_v51, 8  ;;  %v1566_v58 = vshrl.u32 %v1565_v0, 23  ;;  %v1332_v31 = vcvt.s32.f32 %v1325_v7 }
 0x1d5   :  { %vm5060_vm6 = vcmp.le.f32.partialorder %v5740_v52, 0.7853982  ;;  %v1330_v59 = vand.u32 2147483647, %v1329_v42  ;;  %v1417_v28 = vshll.u32 %v1416_v17, 30  ;;  %v1440_v41 = vsub.s32 4, %v1416_v17 }
 0x1d6   :  { %v1476_v16 = vshrl.u32 %v5700_v49, %v1473_v63  ;;  %v1479_v27 = vshrl.u32 %v5701_v47, %v1473_v63  ;;  %v1482_v24 = vshrl.u32 %v5702_v15, %v1473_v63  ;;  %v5074_v4 = vand.u32 8388607, %v5658_v3 }
 0x1d7   :  { %v1333_v62 = vmul.f32 %v1332_v31, %v1330_v59  ;;  %v5076_v14 = vsub.s32 %v1414_v45, %v1417_v28  ;;  %v1475_v51 = vshll.u32 %v5706_v6, %v1472_v26  ;;  %v1485_v0 = vshrl.u32 %v5705_v57, %v1473_v63 }
 0x1d8   :  { %v1471_v48 = vshrl.u32 %v1470_v38, 5  ;;  %v1478_v7 = vshll.u32 %v5700_v49, %v1472_v26  ;;  %v1481_v33 = vshll.u32 %v5701_v47, %v1472_v26  ;;  %v1484_v5 = vshll.u32 %v5702_v15, %v1472_v26 }
 0x1d9   :  { %v1334_v42 = vxor.u32 2147483648, %v1333_v62  ;;  %v1420_v52 = vsub.s32 0, %v5076_v14  ;;  %v1441_v3 = vsel %vm1356_vm8, %v1440_v41, %v1416_v17  ;;  %v1477_v59 = vor.u32 %v1476_v16, %v1475_v51 }
 0x1da   :  { %v1480_v45 = vor.u32 %v1479_v27, %v1478_v7  ;;  %v1483_v31 = vor.u32 %v1482_v24, %v1481_v33  ;;  %v1487_v28 = vshll.u32 %v5705_v57, %v1472_v26  ;;  %v1488_v43 = vshrl.u32 %v5704_v36, %v1473_v63 }
 0x1db   :  { %v1335_v38 = vsel %vm1252_vm7, %v1334_v42, %v1333_v62  ;;  %v3517_v39 = vmin.u32 %v1420_v52, %v5076_v14  ;;  %v1486_v23 = vor.u32 %v1485_v0, %v1484_v5  ;;  %v3524_v50 = vadd.s32 4294967169, %v1566_v58 }
 0x1dc   :  { %v1338_v37 = vsel %vm5002_vm13, %v4659_v53, %v1335_v38  ;;  %v5096_v17 = vsel %vm5060_vm6, 0, %v1441_v3  ;;  %v1474_v41 = vshrl.u32 %v5706_v6, %v1473_v63  ;;  %v1489_v26 = vor.u32 %v1488_v43, %v1487_v28 }
 0x1dd   :  { %3717 = vcosq.f32 %v1338_v37  ;;  %v1422_v16 = vclz %v3517_v39  ;;  %vm1490_vm5 = vcmp.lt.s32.totalorder %v1471_v48, 1  ;;  %vm1493_vm9 = vcmp.lt.s32.totalorder %v1471_v48, 4 }
 0x1de   :  { %3719 = vsinq.f32 %v1338_v37  ;;  %vm1491_vm7 = vcmp.lt.s32.totalorder %v1471_v48, 2  ;;  %v1495_v27 = vsel %vm1493_vm9, %v1483_v31, 2102212464  ;;  %v1498_v24 = vsel %vm1490_vm5, %v1477_v59, %v1480_v45 }
 0x1df   :  { %v3518_v58 = vadd.s32 4294967294, %v1422_v16  ;;  %vm1492_vm2 = vcmp.lt.s32.totalorder %v1471_v48, 3  ;;  %v1499_v62 = vsel %vm1493_vm9, %v1486_v23, 920167782  ;;  %v1502_v10 = vsel %vm1490_vm5, %v1480_v45, %v1483_v31 }
 0x1e0   :  { %v1494_v51 = vsel %vm1490_vm5, %v1474_v41, %v1477_v59  ;;  %v1500_v0 = vsel %vm1492_vm2, %v1483_v31, %v1499_v62  ;;  %v1503_v7 = vsel %vm1493_vm9, %v1489_v26, 1326507024  ;;  %v1572_v3 = vadd.s32 1, %v3524_v50 }
 0x1e1   :  { %vm3519_vm13 = vcmp.lt.s32.totalorder %v3518_v58, 0  ;;  %v1496_v33 = vsel %vm1492_vm2, %v1480_v45, %v1495_v27  ;;  %v1501_v43 = vsel %vm1491_vm7, %v1498_v24, %v1500_v0  ;;  %v1504_v63 = vsel %vm1492_vm2, %v1486_v23, %v1503_v7 }
 0x1e2   :  { %v1425_v39 = vsel %vm3519_vm13, 0, %v3518_v58  ;;  %v1505_v5 = vsel %vm1491_vm7, %v1502_v10, %v1504_v63  ;;  %v5102_v37 = vmul.u32.u64.low %v5067_v25, %v1501_v43  ;;  %v5103_v42 = vmul.u32.u64.high %v5067_v25, %v1501_v43, %v5102_v37 }
 0x1e3   :  { %vm1345_vm12 = vcmp.lt.s32.totalorder %v5056_v61, 2  ;;  %v1426_v52 = vsub.s32 32, %v1425_v39  ;;  %v1430_v59 = vsub.s32 4294967266, %v1425_v39  ;;  %v1447_v31 = vadd.s32 3, %v5096_v17 }
 0x1e4   :  { %vm1573_vm5 = vcmp.gt.s32.totalorder %v1572_v3, 0  ;;  %vm5669_vm9 = vweird.f32 %v4659_v53  ;;  %v1497_v50 = vsel %vm1491_vm7, %v1494_v51, %v1496_v33  ;;  %v1427_v38 = vshll.u32 %v5076_v14, %v1425_v39 }
 0x1e5   :  { %v5111_v23 = vmul.u32.u64.low %v5067_v25, %v1505_v5  ;;  %v5112_v45 = vmul.u32.u64.high %v5067_v25, %v1505_v5, %v5111_v23  ;;  %v1574_v28 = vsel %vm1573_vm5, %v1572_v3, 0  ;;  %v1428_v41 = vshrl.u32 %v5065_v54, %v1426_v52 }
 0x1e6   :  { %v1431_v26 = vadd.s32 127, %v1430_v59  ;;  %v1576_v16 = vand.u32 31, %v1574_v28  ;;  %vm1346_vm2 = vcmp.eq.s32.totalorder %v5056_v61, 0  ;;  %vm1349_vm13 = vcmp.eq.s32.totalorder %v5056_v61, 2 }
 0x1e7   :  { %v1516_v27 = vadd.s32 1, %v5103_v42  ;;  %v5120_v24 = vpop.eup %3717  ;;  %v1429_v58 = vor.u32 %v1428_v41, %v1427_v38  ;;  %v5126_v0 = vand.u32 3, %v1447_v31  ;;  %v1513_v7 = vmul.u32 %v5067_v25, %v1497_v50 }
 0x1e8   :  { %v1432_v62 = vshll.u32 %v1431_v26, 23  ;;  %v1577_v10 = vsub.s32 32, %v1576_v16  ;;  %v5123_v14 = vpop.eup %3719  ;;  %v5666_v54 = vxor.u32 2147483648, %v5120_v24  ;;  %vm1515_vm7 = vc.u32 %v5112_v45, %v5102_v37 }
 0x1e9   :  { %v5667_v3 = vxor.u32 2147483648, %v5123_v14  ;;  %vm1460_vm5 = vcmp.lt.s32.totalorder %v4816_v21, 0  ;;  %v1517_v43 = vsel %vm1515_vm7, %v1516_v27, %v5103_v42  ;;  %v5134_v63 = vshrl.u32 %v1574_v28, 5 }
 0x1ea   :  { %v1433_v33 = vor.u32 4788187, %v1432_v62  ;;  %v1351_v39 = vsel %vm1349_vm13, %v5666_v54, %v5123_v14  ;;  %v1518_v5 = vadd.s32 %v1517_v43, %v1513_v7  ;;  %v1579_v25 = vshll.u32 %v5706_v6, %v1576_v16 }
 0x1eb   :  { %v1580_v52 = vshrl.u32 %v5700_v49, %v1577_v10  ;;  %v1348_v59 = vsel %vm1346_vm2, %v5120_v24, %v5667_v3  ;;  %v1436_v31 = vcvt.s32.f32 %v1429_v58  ;;  %v5743_v50 = vand.u32 2147483647, %v4816_v21 }
 0x1ec   :  { %v1434_v42 = vand.u32 2147483647, %v1433_v33  ;;  %v1583_v28 = vshrl.u32 %v5701_v47, %v1577_v10  ;;  %v1352_v38 = vsel %vm1345_vm12, %v1348_v59, %v1351_v39  ;;  %v1519_v41 = vadd.s32 536870912, %v1518_v5 }
 0x1ed   :  { %vm5150_vm7 = vcmp.le.f32.partialorder %v5743_v50, 0.7853982  ;;  %v1585_v26 = vshll.u32 %v5701_v47, %v1576_v16  ;;  %v1586_v27 = vshrl.u32 %v5702_v15, %v1577_v10  ;;  %v1353_v62 = vsel %vm5669_vm9, nan, %v1352_v38 }
 0x1ee   :  { %v1437_v58 = vmul.f32 %v1436_v31, %v1434_v42  ;;  %v1578_v7 = vshrl.u32 %v5706_v6, %v1577_v10  ;;  %v1582_v33 = vshll.u32 %v5700_v49, %v1576_v16  ;;  %v1520_v43 = vshrl.u32 %v1519_v41, 30  ;;  %1781 = vst [vmem:[#allocation5 + $0x58] sm:$0xff] %v1353_v62 }
 0x1ef   :  { %v1581_v50 = vor.u32 %v1580_v52, %v1579_v25  ;;  %v1587_v54 = vor.u32 %v1586_v27, %v1585_v26  ;;  %v1589_v3 = vshrl.u32 %v5705_v57, %v1577_v10  ;;  %v1588_v39 = vshll.u32 %v5702_v15, %v1576_v16 }
 0x1f0   :  { %v1438_v61 = vxor.u32 2147483648, %v1437_v58  ;;  %v1591_v59 = vshll.u32 %v5705_v57, %v1576_v16  ;;  %v1592_v51 = vshrl.u32 %v5704_v36, %v1577_v10  ;;  %v1521_v48 = vshll.u32 %v1520_v43, 30 }
 0x1f1   :  { %v1544_v38 = vsub.s32 4, %v1520_v43  ;;  %v1584_v42 = vor.u32 %v1583_v28, %v1582_v33  ;;  %vm1594_vm12 = vcmp.lt.s32.totalorder %v5134_v63, 1  ;;  %v1590_v25 = vor.u32 %v1589_v3, %v1588_v39 }
 0x1f2   :  { %v1439_v31 = vsel %vm1356_vm8, %v1438_v61, %v1437_v58  ;;  %v1593_v52 = vor.u32 %v1592_v51, %v1591_v59  ;;  %vm1597_vm2 = vcmp.lt.s32.totalorder %v5134_v63, 4  ;;  %v5174_v26 = vsub.s32 %v1518_v5, %v1521_v48 }
 0x1f3   :  { %v1442_v41 = vsel %vm5060_vm6, %v4811_v11, %v1439_v31  ;;  %v1545_v16 = vsel %vm1460_vm5, %v1544_v38, %v1520_v43  ;;  %v1599_v10 = vsel %vm1597_vm2, %v1587_v54, 2102212464  ;;  %vm1596_vm13 = vcmp.lt.s32.totalorder %v5134_v63, 3 }
 0x1f4   :  { %3721 = vcosq.f32 %v1442_v41  ;;  %v1598_v51 = vsel %vm1594_vm12, %v1578_v7, %v1581_v50  ;;  %v1669_v3 = vand.u32 2139095040, %v5052_v40  ;;  %v1524_v55 = vsub.s32 0, %v5174_v26 }
 0x1f5   :  { %3723 = vsinq.f32 %v1442_v41  ;;  %v5187_v48 = vsel %vm5150_vm7, 0, %v1545_v16  ;;  %v1602_v5 = vsel %vm1594_vm12, %v1581_v50, %v1584_v42  ;;  %v1600_v28 = vsel %vm1596_vm13, %v1584_v42, %v1599_v10 }
 0x1f6   :  { %v1603_v27 = vsel %vm1597_vm2, %v1590_v25, 920167782  ;;  %v1606_v62 = vsel %vm1594_vm12, %v1584_v42, %v1587_v54  ;;  %v1607_v58 = vsel %vm1597_vm2, %v1593_v52, 1326507024  ;;  %v3521_v7 = vmin.u32 %v1524_v55, %v5174_v26 }
 0x1f7   :  { %vm1595_vm8 = vcmp.lt.s32.totalorder %v5134_v63, 2  ;;  %v1604_v33 = vsel %vm1596_vm13, %v1587_v54, %v1603_v27  ;;  %v1608_v43 = vsel %vm1596_vm13, %v1590_v25, %v1607_v58  ;;  %v5746_v50 = vor.u32 8388608, %v5074_v4 }
 0x1f8   :  { %v1605_v61 = vsel %vm1595_vm8, %v1602_v5, %v1604_v33  ;;  %v1609_v39 = vsel %vm1595_vm8, %v1606_v62, %v1608_v43  ;;  %v1670_v38 = vshrl.u32 %v1669_v3, 23  ;;  %v1526_v31 = vclz %v3521_v7 }
 0x1f9   :  { %v1610_v59 = vshll.u32 %v5746_v50, 8  ;;  %v1551_v41 = vadd.s32 3, %v5187_v48  ;;  %v1601_v16 = vsel %vm1595_vm8, %v1598_v51, %v1600_v28  ;;  %v5747_v42 = vand.u32 2147483647, %v5052_v40 }
 0x1fa   :  { %vm5673_vm6 = vweird.f32 %v4811_v11  ;;  %v3522_v54 = vadd.s32 4294967294, %v1526_v31  ;;  %v3528_v25 = vadd.s32 4294967169, %v1670_v38  ;;  %vm1449_vm12 = vcmp.lt.s32.totalorder %v5126_v0, 2 }
 0x1fb   :  { %v1673_v10 = vand.u32 8388607, %v5747_v42  ;;  %v5204_v52 = vmul.u32.u64.low %v1610_v59, %v1609_v39  ;;  %v5205_v53 = vmul.u32.u64.high %v1610_v59, %v1609_v39, %v5204_v52  ;;  %vm1450_vm2 = vcmp.eq.s32.totalorder %v5126_v0, 0 }
 0x1fc   :  { %v5207_v55 = vmul.u32.u64.low %v1610_v59, %v1605_v61  ;;  %v5208_v63 = vmul.u32.u64.high %v1610_v59, %v1605_v61, %v5207_v55  ;;  %vm1453_vm13 = vcmp.eq.s32.totalorder %v5126_v0, 2  ;;  %v1514_v4 = vadd.s32 %v5102_v37, %v5112_v45 }
 0x1fd   :  { %vm3523_vm8 = vcmp.lt.s32.totalorder %v3522_v54, 0  ;;  %v5216_v51 = vand.u32 3, %v1551_v41  ;;  %v1617_v3 = vmul.u32 %v1610_v59, %v1601_v16  ;;  %v1676_v5 = vadd.s32 1, %v3528_v25 }
 0x1fe   :  { %v5218_v28 = vpop.eup %3721  ;;  %v1529_v27 = vsel %vm3523_vm8, 0, %v3522_v54  ;;  %vm1619_vm9 = vc.u32 %v5205_v53, %v5207_v55  ;;  %v1620_v62 = vadd.s32 1, %v5208_v63  ;;  %v1674_v58 = vor.u32 8388608, %v1673_v10 }
 0x1ff   :  { %v5222_v7 = vpop.eup %3723  ;;  %v5671_v33 = vxor.u32 2147483648, %v5218_v28  ;;  %v1530_v43 = vsub.s32 32, %v1529_v27  ;;  %v1534_v61 = vsub.s32 4294967266, %v1529_v27  ;;  %v5226_v37 = vand.u32 3, %v3981_v60 }
 0x200   :  { %v5672_v45 = vxor.u32 2147483648, %v5222_v7  ;;  %v1531_v39 = vshll.u32 %v5174_v26, %v1529_v27  ;;  %v1621_v50 = vsel %vm1619_vm9, %v1620_v62, %v5208_v63  ;;  %vm1677_vm8 = vcmp.gt.s32.totalorder %v1676_v5, 0 }
 0x201   :  { %v1455_v59 = vsel %vm1453_vm13, %v5671_v33, %v5222_v7  ;;  %v1532_v38 = vshrl.u32 %v1514_v4, %v1530_v43  ;;  %v1535_v31 = vadd.s32 127, %v1534_v61  ;;  %v1622_v41 = vadd.s32 %v1621_v50, %v1617_v3 }
 0x202   :  { %v1452_v60 = vsel %vm1450_vm2, %v5218_v28, %v5672_v45  ;;  %vm1564_vm3 = vcmp.lt.s32.totalorder %v4865_v34, 0  ;;  %v1678_v26 = vsel %vm1677_vm8, %v1676_v5, 0  ;;  %v5243_v16 = vand.u32 3, %v4034_v2 }
 0x203   :  { %v5246_v42 = vand.u32 3, %v4110_v18  ;;  %v1456_v10 = vsel %vm1449_vm12, %v1452_v60, %v1455_v59  ;;  %v1533_v52 = vor.u32 %v1532_v38, %v1531_v39  ;;  %v1536_v63 = vshll.u32 %v1535_v31, 23 }
 0x204   :  { %v1623_v54 = vadd.s32 536870912, %v1622_v41  ;;  %v1457_v25 = vsel %vm5673_vm6, nan, %v1456_v10  ;;  %v1680_v4 = vand.u32 31, %v1678_v26  ;;  %v5252_v3 = vshll.u32 %v1674_v58, 8 }
 0x205   :  { %v5255_v5 = vand.u32 3, %v4276_v1  ;;  %v1537_v2 = vor.u32 4788187, %v1536_v63  ;;  %v5748_v27 = vand.u32 2147483647, %v4865_v34  ;;  %v5264_v0 = vadd.s32 %v5207_v55, %v5205_v53  ;;  %1782 = vst [vmem:[#allocation5 + $0x60] sm:$0xff] %v1457_v25 }
 0x206   :  { %v1624_v62 = vshrl.u32 %v1623_v54, 30  ;;  %v5267_v43 = vand.u32 3, %v4376_v44  ;;  %v5269_v58 = vshrl.u32 %v1678_v26, 5  ;;  %v1681_v61 = vsub.s32 32, %v1680_v4 }
 0x207   :  { %vm5259_vm9 = vcmp.le.f32.partialorder %v5748_v27, 0.7853982  ;;  %vm1881_vm12 = vcmp.eq.s32.totalorder %v5226_v37, 0  ;;  %vm1884_vm2 = vcmp.eq.s32.totalorder %v5226_v37, 2  ;;  %v1538_v1 = vand.u32 2147483647, %v1537_v2 }
 0x208   :  { %v1540_v39 = vcvt.s32.f32 %v1533_v52  ;;  %v1625_v50 = vshll.u32 %v1624_v62, 30  ;;  %v1648_v59 = vsub.s32 4, %v1624_v62  ;;  %v1684_v38 = vshrl.u32 %v5700_v49, %v1681_v61 }
 0x209   :  { %v1687_v53 = vshrl.u32 %v5701_v47, %v1681_v61  ;;  %v1690_v55 = vshrl.u32 %v5702_v15, %v1681_v61  ;;  %v5751_v44 = vxor.u32 2147483648, %v4105_v35  ;;  %v1683_v10 = vshll.u32 %v5706_v6, %v1680_v4 }
 0x20a   :  { %v1541_v60 = vmul.f32 %v1540_v39, %v1538_v1  ;;  %v5279_v26 = vsub.s32 %v1622_v41, %v1625_v50  ;;  %v1693_v63 = vshrl.u32 %v5705_v57, %v1681_v61  ;;  %vm1880_vm13 = vcmp.lt.s32.totalorder %v5226_v37, 2 }
 0x20b   :  { %v1883_v31 = vsel %vm1881_vm12, %v4100_v19, %v5751_v44  ;;  %v1686_v52 = vshll.u32 %v5700_v49, %v1680_v4  ;;  %v1689_v54 = vshll.u32 %v5701_v47, %v1680_v4  ;;  %v1692_v25 = vshll.u32 %v5702_v15, %v1680_v4 }
 0x20c   :  { %v5752_v2 = vxor.u32 2147483648, %v4100_v19  ;;  %v1542_v41 = vxor.u32 2147483648, %v1541_v60  ;;  %v1628_v1 = vsub.s32 0, %v5279_v26  ;;  %v1649_v39 = vsel %vm1564_vm3, %v1648_v59, %v1624_v62 }
 0x20d   :  { %v1685_v50 = vor.u32 %v1684_v38, %v1683_v10  ;;  %v1688_v44 = vor.u32 %v1687_v53, %v1686_v52  ;;  %v1691_v33 = vor.u32 %v1690_v55, %v1689_v54  ;;  %v1695_v49 = vshll.u32 %v5705_v57, %v1680_v4 }
 0x20e   :  { %v1886_v27 = vsel %vm1884_vm2, %v5752_v2, %v4105_v35  ;;  %v1696_v47 = vshrl.u32 %v5704_v36, %v1681_v61  ;;  %v1543_v15 = vsel %vm1460_vm5, %v1542_v41, %v1541_v60  ;;  %v3525_v19 = vmin.u32 %v1628_v1, %v5279_v26 }
 0x20f   :  { %v1682_v35 = vshrl.u32 %v5706_v6, %v1681_v61  ;;  %v1694_v2 = vor.u32 %v1693_v63, %v1692_v25  ;;  %v1546_v45 = vsel %vm5150_vm7, %v4816_v21, %v1543_v15  ;;  %v5306_v62 = vsel %vm5259_vm9, 0, %v1649_v39 }
 0x210   :  { %v1697_v59 = vor.u32 %v1696_v47, %v1695_v49  ;;  %vm1698_vm8 = vcmp.lt.s32.totalorder %v5269_v58, 1  ;;  %3725 = vcosq.f32 %v1546_v45  ;;  %v1630_v36 = vclz %v3525_v19 }
 0x211   :  { %vm1699_vm5 = vcmp.lt.s32.totalorder %v5269_v58, 2  ;;  %vm1701_vm12 = vcmp.lt.s32.totalorder %v5269_v58, 4  ;;  %3727 = vsinq.f32 %v1546_v45  ;;  %vm1700_vm2 = vcmp.lt.s32.totalorder %v5269_v58, 3 }
 0x212   :  { %v1703_v57 = vsel %vm1701_vm12, %v1691_v33, 2102212464  ;;  %v1706_v6 = vsel %vm1698_vm8, %v1685_v50, %v1688_v44  ;;  %v3526_v23 = vadd.s32 4294967294, %v1630_v36  ;;  %v1702_v4 = vsel %vm1698_vm8, %v1682_v35, %v1685_v50 }
 0x213   :  { %v1707_v61 = vsel %vm1701_vm12, %v1694_v2, 920167782  ;;  %v1710_v38 = vsel %vm1698_vm8, %v1688_v44, %v1691_v33  ;;  %v1704_v53 = vsel %vm1700_vm2, %v1688_v44, %v1703_v57  ;;  %v1711_v60 = vsel %vm1701_vm12, %v1697_v59, 1326507024 }
 0x214   :  { %v1708_v55 = vsel %vm1700_vm2, %v1691_v33, %v1707_v61  ;;  %v1887_v10 = vsel %vm1880_vm13, %v1883_v31, %v1886_v27  ;;  %vm1557_vm7 = vcmp.eq.s32.totalorder %v5216_v51, 2  ;;  %vm3527_vm6 = vcmp.lt.s32.totalorder %v3526_v23, 0 }
 0x215   :  { %v5316_v63 = vadd.s32 3, %v5306_v62  ;;  %v1709_v45 = vsel %vm1699_vm5, %v1706_v6, %v1708_v55  ;;  %v1712_v52 = vsel %vm1700_vm2, %v1694_v2, %v1711_v60  ;;  %vm1554_vm0 = vcmp.eq.s32.totalorder %v5216_v51, 0 }
 0x216   :  { %v1633_v54 = vsel %vm3527_vm6, 0, %v3526_v23  ;;  %v1713_v33 = vsel %vm1699_vm5, %v1710_v38, %v1712_v52  ;;  %v5324_v25 = vmul.u32.u64.low %v5252_v3, %v1709_v45  ;;  %v5325_v37 = vmul.u32.u64.high %v5252_v3, %v1709_v45, %v5324_v25 }
 0x217   :  { %vm1553_vm13 = vcmp.lt.s32.totalorder %v5216_v51, 2  ;;  %v1634_v31 = vsub.s32 32, %v1633_v54  ;;  %v1638_v27 = vsub.s32 4294967266, %v1633_v54  ;;  %v1705_v41 = vsel %vm1699_vm5, %v1702_v4, %v1704_v53 }
 0x218   :  { %v1888_v1 = vsel %vm198_vm14, nan, %v1887_v10  ;;  %vm1550_vm6 = vweird.f32 %v4816_v21  ;;  %v1635_v39 = vshll.u32 %v5279_v26, %v1633_v54  ;;  %vm1984_vm8 = vcmp.eq.s32.totalorder %v5243_v16, 0 }
 0x219   :  { %v5336_v50 = vmul.u32.u64.low %v5252_v3, %v1713_v33  ;;  %v5337_v44 = vmul.u32.u64.high %v5252_v3, %v1713_v33, %v5336_v50  ;;  %3435 = vst [vmem:[#allocation5 + $0x80] sm:$0xff] %v1888_v1  ;;  %v1636_v49 = vshrl.u32 %v5264_v0, %v1634_v31  ;;  %v1639_v47 = vadd.s32 127, %v1638_v27 }
 0x21a   :  { %v5753_v58 = vxor.u32 2147483648, %v4166_v8  ;;  %vm1987_vm14 = vcmp.eq.s32.totalorder %v5243_v16, 2  ;;  %v1721_v12 = vmul.u32 %v5252_v3, %v1705_v41  ;;  %v1724_v26 = vadd.s32 1, %v5325_v37  ;;  %v5351_v2 = vpop.eup %3725 }
 0x21b   :  { %vm1983_vm5 = vcmp.lt.s32.totalorder %v5243_v16, 2  ;;  %v5754_v19 = vxor.u32 2147483648, %v4159_v9  ;;  %v1637_v0 = vor.u32 %v1636_v49, %v1635_v39  ;;  %v1640_v59 = vshll.u32 %v1639_v47, 23  ;;  %v5354_v57 = vpop.eup %3727 }
 0x21c   :  { %v1986_v15 = vsel %vm1984_vm8, %v4159_v9, %v5753_v58  ;;  %vm2086_vm12 = vcmp.lt.s32.totalorder %v5246_v42, 2  ;;  %v1558_v6 = vxor.u32 2147483648, %v5351_v2  ;;  %vm1723_vm2 = vc.u32 %v5337_v44, %v5324_v25 }
 0x21d   :  { %v1989_v35 = vsel %vm1987_vm14, %v5754_v19, %v4166_v8  ;;  %vm2087_vm8 = vcmp.eq.s32.totalorder %v5246_v42, 0  ;;  %v1555_v9 = vxor.u32 2147483648, %v5354_v57  ;;  %v1641_v8 = vor.u32 4788187, %v1640_v59 }
 0x21e   :  { %v1990_v36 = vsel %vm1983_vm5, %v1986_v15, %v1989_v35  ;;  %v1725_v3 = vsel %vm1723_vm2, %v1724_v26, %v5325_v37  ;;  %v5755_v23 = vxor.u32 2147483648, %v4247_v30  ;;  %v1559_v61 = vsel %vm1557_vm7, %v1558_v6, %v5354_v57  ;;  %v5762_v15 = vld [vmem:[#allocation14_spill] sm:$0xff] }
 0x21f   :  { %v1991_v16 = vsel %vm302_vm4, nan, %v1990_v36  ;;  %v1644_v13 = vcvt.s32.f32 %v1637_v0  ;;  %v1726_v38 = vadd.s32 %v1725_v3, %v1721_v12  ;;  %vm2090_vm4 = vcmp.eq.s32.totalorder %v5246_v42, 2  ;;  %v5763_v26 = vld [vmem:[#allocation18_spill] sm:$0xff]  ;;  %v5765_v36 = vld [vmem:[#allocation17_spill] sm:$0xff] }
 0x220   :  { %v2089_v4 = vsel %vm2087_vm8, %v4242_v56, %v5755_v23  ;;  %3436 = vst [vmem:[#allocation5 + $0x88] sm:$0xff] %v1991_v16  ;;  %v1556_v53 = vsel %vm1554_vm0, %v5351_v2, %v1555_v9  ;;  %v1642_v55 = vand.u32 2147483647, %v1641_v8  ;;  %v5756_v60 = vxor.u32 2147483648, %v4242_v56  ;;  %v5767_v8 = vld [vmem:[#allocation16_spill] sm:$0xff] }
 0x221   :  { %vm2190_vm14 = vcmp.eq.s32.totalorder %v5255_v5, 0  ;;  %v1560_v45 = vsel %vm1553_vm13, %v1556_v53, %v1559_v61  ;;  %v1727_v52 = vadd.s32 536870912, %v1726_v38  ;;  %v5757_v33 = vxor.u32 2147483648, %v4369_v20 }
 0x222   :  { %v2092_v10 = vsel %vm2090_vm4, %v5756_v60, %v4247_v30  ;;  %v1561_v31 = vsel %vm1550_vm6, nan, %v1560_v45  ;;  %v1645_v27 = vmul.f32 %v1644_v13, %v1642_v55  ;;  %vm2193_vm0 = vcmp.eq.s32.totalorder %v5255_v5, 2  ;;  %v5771_v13 = vld [vmem:[#allocation21_spill] sm:$0xff] }
 0x223   :  { %v2093_v54 = vsel %vm2086_vm12, %v2089_v4, %v2092_v10  ;;  %v2192_v37 = vsel %vm2190_vm14, %v4363_v29, %v5757_v33  ;;  %v5394_v30 = vshrl.u32 %v1727_v52, 30  ;;  %1783 = vst [vmem:[#allocation5 + $0x68] sm:$0xff] %v1561_v31  ;;  %vm2189_vm7 = vcmp.lt.s32.totalorder %v5255_v5, 2  ;;  %v5773_v10 = vld [vmem:[#allocation20_spill] sm:$0xff]  ;;  %v5774_v52 = vld [vmem:[#allocation26_spill] sm:$0xff] }
 0x224   :  { %v2094_v56 = vsel %vm406_vm15, nan, %v2093_v54  ;;  %v5758_v51 = vxor.u32 2147483648, %v4363_v29  ;;  %vm2293_vm13 = vcmp.eq.s32.totalorder %v5267_v43, 0  ;;  %v1646_v41 = vxor.u32 2147483648, %v1645_v27 }
 0x225   :  { %3437 = vst [vmem:[#allocation5 + $0x90] sm:$0xff] %v2094_v56  ;;  %v5759_v39 = vxor.u32 2147483648, %v4455_v32  ;;  %vm2296_vm15 = vcmp.eq.s32.totalorder %v5267_v43, 2  ;;  %v1729_v50 = vshll.u32 %v5394_v30, 30  ;;  %vm2292_vm5 = vcmp.lt.s32.totalorder %v5267_v43, 2 }
 0x226   :  { %v2195_v42 = vsel %vm2193_vm0, %v5758_v51, %v4369_v20  ;;  %v5761_v29 = vxor.u32 2147483648, %v4448_v46  ;;  %v1647_v47 = vsel %vm1564_vm3, %v1646_v41, %v1645_v27  ;;  %v2394_v12 = vand.u32 3, %v5762_v15  ;;  %v5775_v27 = vld [vmem:[#allocation10_spill] sm:$0xff]  ;;  %v5777_v41 = vld [vmem:[#allocation11_spill] sm:$0xff] }
 0x227   :  { %v2196_v1 = vsel %vm2189_vm7, %v2192_v37, %v2195_v42  ;;  %v2295_v22 = vsel %vm2293_vm13, %v4448_v46, %v5759_v39  ;;  %v2497_v19 = vand.u32 3, %v5763_v26  ;;  %v1650_v35 = vsel %vm5259_vm9, %v4865_v34, %v1647_v47  ;;  %v5779_v39 = vld [vmem:[#allocation25_spill] sm:$0xff]  ;;  %v5785_v47 = vld [vmem:[#allocation28_spill] sm:$0xff] }
 0x228   :  { %v2197_v5 = vsel %vm510_vm1, nan, %v2196_v1  ;;  %v2298_v20 = vsel %vm2296_vm15, %v5761_v29, %v4455_v32  ;;  %v5419_v0 = vsub.s32 %v1726_v38, %v1729_v50  ;;  %3729 = vcosq.f32 %v1650_v35  ;;  %v5783_v29 = vld [vmem:[#allocation29_spill] sm:$0xff] }
 0x229   :  { %v2299_v58 = vsel %vm2292_vm5, %v2295_v22, %v2298_v20  ;;  %3438 = vst [vmem:[#allocation5 + $0x98] sm:$0xff] %v2197_v5  ;;  %v5424_v46 = vand.u32 3, %v5316_v63  ;;  %vm2396_vm1 = vcmp.eq.s32.totalorder %v2394_v12, 0  ;;  %3731 = vsinq.f32 %v1650_v35  ;;  %v5769_v63 = vld [vmem:[#allocation22_spill] sm:$0xff] }
 0x22a   :  { %v2300_v59 = vsel %vm614_vm11, nan, %v2299_v58  ;;  %v1732_v32 = vsub.s32 0, %v5419_v0  ;;  %v5766_v16 = vxor.u32 2147483648, %v5765_v36  ;;  %vm2395_vm3 = vcmp.lt.s32.totalorder %v2394_v12, 2 }
 0x22b   :  { %3439 = vst [vmem:[#allocation5 + $0xa0] sm:$0xff] %v2300_v59  ;;  %vm2399_vm9 = vcmp.eq.s32.totalorder %v2394_v12, 2  ;;  %vm2499_vm12 = vcmp.eq.s32.totalorder %v2497_v19, 0  ;;  %v5768_v23 = vxor.u32 2147483648, %v5767_v8  ;;  %v5770_v61 = vxor.u32 2147483648, %v5769_v63 }
 0x22c   :  { %v2398_v3 = vsel %vm2396_vm1, %v5767_v8, %v5766_v16  ;;  %v3529_v18 = vmin.u32 %v1732_v32, %v5419_v0  ;;  %vm2502_vm11 = vcmp.eq.s32.totalorder %v2497_v19, 2  ;;  %vm1661_vm2 = vcmp.eq.s32.totalorder %v5424_v46, 2  ;;  %v5788_v32 = vld [vmem:[#allocation27_spill] sm:$0xff] }
 0x22d   :  { %v2401_v4 = vsel %vm2399_vm9, %v5768_v23, %v5765_v36  ;;  %v2501_v38 = vsel %vm2499_vm12, %v5771_v13, %v5770_v61  ;;  %v5772_v55 = vxor.u32 2147483648, %v5771_v13  ;;  %v2600_v45 = vand.u32 3, %v5773_v10 }
 0x22e   :  { %v2402_v53 = vsel %vm2395_vm3, %v2398_v3, %v2401_v4  ;;  %v2703_v54 = vand.u32 3, %v5774_v52  ;;  %vm1658_vm8 = vcmp.eq.s32.totalorder %v5424_v46, 0  ;;  %v1722_v33 = vadd.s32 %v5324_v25, %v5337_v44  ;;  %v5781_v44 = vld [vmem:[#allocation24_spill] sm:$0xff]  ;;  %v5794_v52 = vld [vmem:[#allocation30_spill] sm:$0xff] }
 0x22f   :  { %v2504_v60 = vsel %vm2502_vm11, %v5772_v55, %v5769_v63  ;;  %v1734_v37 = vclz %v3529_v18  ;;  %v1752_v31 = vsub.s32 4, %v5394_v30  ;;  %vm2498_vm4 = vcmp.lt.s32.totalorder %v2497_v19, 2  ;;  %v5789_v63 = vld [vmem:[#allocation13_spill] sm:$0xff] }
 0x230   :  { %vm1657_vm14 = vcmp.lt.s32.totalorder %v5424_v46, 2  ;;  %vm5776_vm0 = vweird.f32 %v5775_v27  ;;  %v2505_v51 = vsel %vm2498_vm4, %v2501_v38, %v2504_v60  ;;  %vm2601_vm7 = vcmp.lt.s32.totalorder %v2600_v45, 2  ;;  %v5793_v60 = vld [vmem:[#allocation31_spill] sm:$0xff] }
 0x231   :  { %v2403_v56 = vsel %vm5776_vm0, nan, %v2402_v53  ;;  %vm2602_vm13 = vcmp.eq.s32.totalorder %v2600_v45, 0  ;;  %vm1654_vm15 = vweird.f32 %v4865_v34  ;;  %v3530_v42 = vadd.s32 4294967294, %v1734_v37  ;;  %v5795_v37 = vld [vmem:[#allocation33_spill] sm:$0xff] }
 0x232   :  { %vm5778_vm5 = vweird.f32 %v5777_v41  ;;  %v5780_v25 = vxor.u32 2147483648, %v5779_v39  ;;  %vm2605_vm1 = vcmp.eq.s32.totalorder %v2600_v45, 2  ;;  %3440 = vst [vmem:[#allocation5 + $0xa8] sm:$0xff] %v2403_v56  ;;  %v5782_v50 = vxor.u32 2147483648, %v5781_v44  ;;  %v5465_v26 = vpop.eup %3729 }
 0x233   :  { %v2506_v1 = vsel %vm5778_vm5, nan, %v2505_v51  ;;  %vm2704_vm3 = vcmp.lt.s32.totalorder %v2703_v54, 2  ;;  %vm2705_vm9 = vcmp.eq.s32.totalorder %v2703_v54, 0  ;;  %vm2708_vm12 = vcmp.eq.s32.totalorder %v2703_v54, 2  ;;  %v5470_v16 = vpop.eup %3731 }
 0x234   :  { %v2604_v22 = vsel %vm2602_vm13, %v5781_v44, %v5780_v25  ;;  %v2607_v49 = vsel %vm2605_vm1, %v5782_v50, %v5779_v39  ;;  %3441 = vst [vmem:[#allocation5 + $0xb0] sm:$0xff] %v2506_v1  ;;  %vm3531_vm11 = vcmp.lt.s32.totalorder %v3530_v42, 0  ;;  %v5784_v20 = vxor.u32 2147483648, %v5783_v29  ;;  %v5800_v50 = vld [vmem:[#allocation15_spill] sm:$0xff] }
 0x235   :  { %v2608_v5 = vsel %vm2601_vm7, %v2604_v22, %v2607_v49  ;;  %v5786_v15 = vxor.u32 2147483648, %v5785_v47  ;;  %v1737_v19 = vsel %vm3531_vm11, 0, %v3530_v42  ;;  %v2806_v36 = vand.u32 3, %v5788_v32 }
 0x236   :  { %v2707_v58 = vsel %vm2705_vm9, %v5785_v47, %v5784_v20  ;;  %v2609_v43 = vsel %vm926_vm10, nan, %v2608_v5  ;;  %v1662_v8 = vxor.u32 2147483648, %v5465_v26  ;;  %v1738_v3 = vsub.s32 32, %v1737_v19  ;;  %v5802_v5 = vld [vmem:[#allocation35_spill] sm:$0xff]  ;;  %v5804_v20 = vld [vmem:[#allocation34_spill] sm:$0xff] }
 0x237   :  { %v2710_v12 = vsel %vm2708_vm12, %v5786_v15, %v5783_v29  ;;  %v1739_v18 = vshll.u32 %v5419_v0, %v1737_v19  ;;  %v1742_v23 = vsub.s32 4294967266, %v1737_v19  ;;  %3442 = vst [vmem:[#allocation5 + $0xb8] sm:$0xff] %v2609_v43  ;;  %v1659_v4 = vxor.u32 2147483648, %v5470_v16  ;;  %v5791_v0 = vld [vmem:[#allocation32_spill] sm:$0xff] }
 0x238   :  { %v2711_v59 = vsel %vm2704_vm3, %v2707_v58, %v2710_v12  ;;  %vm5790_vm4 = vweird.f32 %v5789_v63  ;;  %vm2807_vm0 = vcmp.lt.s32.totalorder %v2806_v36, 2  ;;  %vm2808_vm7 = vcmp.eq.s32.totalorder %v2806_v36, 0  ;;  %v5808_v63 = vld [vmem:[#allocation19_spill] sm:$0xff] }
 0x239   :  { %v2712_v61 = vsel %vm5790_vm4, nan, %v2711_v59  ;;  %v1663_v13 = vsel %vm1661_vm2, %v1662_v8, %v5470_v16  ;;  %vm1668_vm10 = vcmp.lt.s32.totalorder %v5052_v40, 0  ;;  %v1740_v38 = vshrl.u32 %v1722_v33, %v1738_v3 }
 0x23a   :  { %v1743_v53 = vadd.s32 127, %v1742_v23  ;;  %v5792_v55 = vxor.u32 2147483648, %v5791_v0  ;;  %3443 = vst [vmem:[#allocation5 + $0xc0] sm:$0xff] %v2712_v61  ;;  %v1660_v45 = vsel %vm1658_vm8, %v5465_v26, %v1659_v4  ;;  %vm2811_vm13 = vcmp.eq.s32.totalorder %v2806_v36, 2 }
 0x23b   :  { %v2909_v54 = vand.u32 3, %v5794_v52  ;;  %v3012_v27 = vand.u32 3, %v5795_v37  ;;  %v1664_v33 = vsel %vm1657_vm14, %v1660_v45, %v1663_v13  ;;  %v1741_v56 = vor.u32 %v1740_v38, %v1739_v18  ;;  %v5810_v13 = vld [vmem:[#allocation23_spill] sm:$0xff] }
 0x23c   :  { %v2810_v10 = vsel %vm2808_vm7, %v5793_v60, %v5792_v55  ;;  %v1744_v51 = vshll.u32 %v1743_v53, 23  ;;  %v5796_v42 = vxor.u32 2147483648, %v5793_v60  ;;  %v1665_v1 = vsel %vm1654_vm15, nan, %v1664_v33 }
 0x23d   :  { %vm2910_vm2 = vcmp.lt.s32.totalorder %v2909_v54, 2  ;;  %vm2911_vm8 = vcmp.eq.s32.totalorder %v2909_v54, 0  ;;  %v5797_v25 = vand.u32 2147483647, %v5052_v40  ;;  %v1748_v22 = vcvt.s32.f32 %v1741_v56  ;;  %1784 = vst [vmem:[#allocation5 + $0x70] sm:$0xff] %v1665_v1 }
 0x23e   :  { %v2813_v41 = vsel %vm2811_vm13, %v5796_v42, %v5791_v0  ;;  %v1745_v46 = vor.u32 4788187, %v1744_v51  ;;  %vm5801_vm14 = vweird.f32 %v5800_v50  ;;  %v5803_v29 = vxor.u32 2147483648, %v5802_v5 }
 0x23f   :  { %v2814_v39 = vsel %vm2807_vm0, %v2810_v10, %v2813_v41  ;;  %vm5503_vm5 = vcmp.le.f32.partialorder %v5797_v25, 0.7853982  ;;  %vm2914_vm1 = vcmp.eq.s32.totalorder %v2909_v54, 2  ;;  %vm3013_vm3 = vcmp.lt.s32.totalorder %v3012_v27, 2 }
 0x240   :  { %v2815_v49 = vsel %vm5801_vm14, nan, %v2814_v39  ;;  %v2913_v47 = vsel %vm2911_vm8, %v5804_v20, %v5803_v29  ;;  %vm3014_vm9 = vcmp.eq.s32.totalorder %v3012_v27, 0  ;;  %vm3017_vm12 = vcmp.eq.s32.totalorder %v3012_v27, 2 }
 0x241   :  { %3444 = vst [vmem:[#allocation5 + $0xc8] sm:$0xff] %v2815_v49  ;;  %v1746_v58 = vand.u32 2147483647, %v1745_v46  ;;  %v5805_v15 = vxor.u32 2147483648, %v5804_v20  ;;  %v5806_v19 = vxor.u32 2147483648, %v5123_v14  ;;  %v5807_v43 = vxor.u32 2147483648, %v5120_v24 }
 0x242   :  { %v3115_v3 = vand.u32 3, %v5096_v17  ;;  %v3218_v18 = vand.u32 3, %v5187_v48  ;;  %vm5809_vm11 = vweird.f32 %v5808_v63  ;;  %vm5811_vm4 = vweird.f32 %v5810_v13 }
 0x243   :  { %v2916_v12 = vsel %vm2914_vm1, %v5805_v15, %v5802_v5  ;;  %v3016_v35 = vsel %vm3014_vm9, %v5120_v24, %v5806_v19  ;;  %v3019_v59 = vsel %vm3017_vm12, %v5807_v43, %v5123_v14  ;;  %v1749_v23 = vmul.f32 %v1748_v22, %v1746_v58 }
 0x244   :  { %v2917_v32 = vsel %vm2910_vm2, %v2913_v47, %v2916_v12  ;;  %v3020_v36 = vsel %vm3013_vm3, %v3016_v35, %v3019_v59  ;;  %v3321_v53 = vand.u32 3, %v5306_v62  ;;  %v1753_v24 = vsel %vm1668_vm10, %v1752_v31, %v5394_v30 }
 0x245   :  { %v2918_v61 = vsel %vm5809_vm11, nan, %v2917_v32  ;;  %v3021_v38 = vsel %vm5811_vm4, nan, %v3020_v36  ;;  %vm3116_vm0 = vcmp.lt.s32.totalorder %v3115_v3, 2  ;;  %vm3117_vm7 = vcmp.eq.s32.totalorder %v3115_v3, 0 }
 0x246   :  { %vm3120_vm13 = vcmp.eq.s32.totalorder %v3115_v3, 2  ;;  %3445 = vst [vmem:[#allocation5 + $0xd0] sm:$0xff] %v2918_v61  ;;  %3446 = vst [vmem:[#allocation5 + $0xd8] sm:$0xff] %v3021_v38  ;;  %v1750_v17 = vxor.u32 2147483648, %v1749_v23  ;;  %v5812_v14 = vxor.u32 2147483648, %v5222_v7  ;;  %v5813_v0 = vxor.u32 2147483648, %v5218_v28 }
 0x247   :  { %vm3220_vm2 = vcmp.eq.s32.totalorder %v3218_v18, 0  ;;  %vm3219_vm8 = vcmp.lt.s32.totalorder %v3218_v18, 2  ;;  %vm3223_vm14 = vcmp.eq.s32.totalorder %v3218_v18, 2  ;;  %vm5814_vm1 = vweird.f32 %v4811_v11 }
 0x248   :  { %v3119_v48 = vsel %vm3117_vm7, %v5218_v28, %v5812_v14  ;;  %v3122_v62 = vsel %vm3120_vm13, %v5813_v0, %v5222_v7  ;;  %v3222_v30 = vsel %vm3220_vm2, %v5351_v2, %v1555_v9  ;;  %v1751_v31 = vsel %vm1668_vm10, %v1750_v17, %v1749_v23 }
 0x249   :  { %v3123_v55 = vsel %vm3116_vm0, %v3119_v48, %v3122_v62  ;;  %v3225_v10 = vsel %vm3223_vm14, %v1558_v6, %v5354_v57  ;;  %vm3323_vm3 = vcmp.eq.s32.totalorder %v3321_v53, 0  ;;  %v1754_v28 = vsel %vm5503_vm5, %v5052_v40, %v1751_v31 }
 0x24a   :  { %v3124_v60 = vsel %vm5814_vm1, nan, %v3123_v55  ;;  %v3226_v7 = vsel %vm3219_vm8, %v3222_v30, %v3225_v10  ;;  %v3325_v9 = vsel %vm3323_vm3, %v5465_v26, %v1659_v4  ;;  %vm3326_vm9 = vcmp.eq.s32.totalorder %v3321_v53, 2 }
 0x24b   :  { %3447 = vst [vmem:[#allocation5 + $0xe0] sm:$0xff] %v3124_v60  ;;  %3733 = vcosq.f32 %v1754_v28  ;;  %v3227_v11 = vsel %vm1550_vm6, nan, %v3226_v7  ;;  %vm3322_vm10 = vcmp.lt.s32.totalorder %v3321_v53, 2  ;;  %v3328_v2 = vsel %vm3326_vm9, %v1662_v8, %v5470_v16 }
 0x24c   :  { %v1755_v57 = vsel %vm5503_vm5, 0, %v1753_v24  ;;  %3735 = vsinq.f32 %v1754_v28  ;;  %v3329_v6 = vsel %vm3322_vm10, %v3325_v9, %v3328_v2  ;;  %3448 = vst [vmem:[#allocation5 + $0xe8] sm:$0xff] %v3227_v11 }
 0x24d   :  { %v3330_v4 = vsel %vm1654_vm15, nan, %v3329_v6  ;;  %v1759_v45 = vadd.s32 3, %v1755_v57  ;;  %v3424_v54 = vand.u32 3, %v1755_v57  ;;  %vm1758_vm15 = vweird.f32 %v5052_v40 }
 0x24e   :  { %3449 = vst [vmem:[#allocation5 + $0xf0] sm:$0xff] %v3330_v4 }
 0x24f   :  { %v1760_v52 = vand.u32 3, %v1759_v45  ;;  %vm3429_vm12 = vcmp.eq.s32.totalorder %v3424_v54, 2  ;;  %vm3426_vm5 = vcmp.eq.s32.totalorder %v3424_v54, 0  ;;  %vm3425_vm0 = vcmp.lt.s32.totalorder %v3424_v54, 2 }
 0x251   :  { %vm1765_vm6 = vcmp.eq.s32.totalorder %v1760_v52, 2  ;;  %vm1762_vm11 = vcmp.eq.s32.totalorder %v1760_v52, 0  ;;  %vm1761_vm4 = vcmp.lt.s32.totalorder %v1760_v52, 2 }
 0x255   :  { %v3734_v21 = vpop.eup %3733 }
 0x256   :  { %v3736_v37 = vpop.eup %3735  ;;  %v1766_v27 = vxor.u32 2147483648, %v3734_v21 }
 0x257   :  { %v1763_v33 = vxor.u32 2147483648, %v3736_v37 }
 0x258   :  { %v1767_v26 = vsel %vm1765_vm6, %v1766_v27, %v3736_v37  ;;  %v3431_v16 = vsel %vm3429_vm12, %v1766_v27, %v3736_v37 }
 0x259   :  { %v1764_v8 = vsel %vm1762_vm11, %v3734_v21, %v1763_v33  ;;  %v3428_v34 = vsel %vm3426_vm5, %v3734_v21, %v1763_v33 }
 0x25a   :  { %v1768_v56 = vsel %vm1761_vm4, %v1764_v8, %v1767_v26  ;;  %v3432_v51 = vsel %vm3425_vm0, %v3428_v34, %v3431_v16 }
 0x25b   :  { %v1769_v42 = vsel %vm1758_vm15, nan, %v1768_v56  ;;  %v3433_v41 = vsel %vm1758_vm15, nan, %v3432_v51 }
 0x25c   :  { %1785 = vst [vmem:[#allocation5 + $0x78] sm:$0xff] %v1769_v42  ;;  %3450 = vst [vmem:[#allocation5 + $0xf8] sm:$0xff] %v3433_v41 }
 0x25d   :  { %3770 = shalt.err (!%p3767_p12)
}
 0x25e   :  { %s3771_s14 = scalar_lea.hbm %s5583_s2, 4096 }
 0x25f   :  { %p3772_p13 = scmp.ne.s32.totalorder %s5583_s2, %s3771_s14  ;;  %p3775_p0 = scmp.lt.u32.totalorder %s3771_s14, %s5583_s2 }
 0x261   :  { %p3777_p1 = pnand %p3775_p0, %p3772_p13 }
 0x263   :  { %3780 = shalt.err (!%p3777_p1)
}
 0x264   :  { %3462 = dma.vmem_to_hbm [thread:$0]  %s3457_s10, 4096, %s5583_s2, [#allocation4], %s3786_s19, %s3786_s19, %s3787_s20  }
 0x265   :  { %3783 = dma.done.wait [#allocation4], 4096  }
 0x266   :  { %3784 = vsyncadd [#allocation4], 4294963200 }
 0x267   :  { %3466 = vsyncpa [#allocation3], 1 }
 0x268   :  { %3467 = vsyncpa [#allocation4], 1 }

</bundles_post_ra>
